<compile_context>
chip_gen: v6e
topology: v6e:2x2x1
jax: 0.10.0
libtpu: 0.0.40
codegen_flags: <defaults>
</compile_context>

<pallas_src>
import functools

import jax
import jax.numpy as jnp
from jax import lax
from jax.experimental import pallas as pl
from jax.experimental.pallas import tpu as pltpu


def _round_up(x, m):
    return (x + m - 1) // m * m


def _make_kernel(*, Cin, CP, C_store, K, stride, dilation, Wp_pad, Wout,
                 TR, TW, in_rows_blk, halo_fetch, scr_rows, pw_chunk_rows):
    halo_w = (K - 1) * dilation
    n_cg = CP // 128

    def kernel(xa_ref, xb_ref, pw_ref, dw_ref, o_ref, scr_ref):
        # xa_ref: (1, in_rows_blk, Wp_pad, Cin)  fresh zero-padded input rows
        # xb_ref: (1, halo_fetch,  Wp_pad, Cin)  bottom-halo rows (next block)
        # pw_ref: (Cin, CP)                      pointwise weights, lane-dense
        # dw_ref: (K*K, CP)                      depthwise taps, tap-major
        # o_ref:  (1, TR, Wout, C_store)
        # scr_ref: VMEM (scr_rows, Wp_pad, CP) f32  strip intermediate

        # ---- pointwise 1x1 conv (MXU) + ReLU into the strip scratch --------
        pw = pw_ref[...]                    # native dtype; MXU accumulates f32

        def pw_rows(x3d, r0, g):
            x2d = x3d.reshape(g * Wp_pad, Cin)          # tile-aligned reshape
            y = jnp.dot(x2d, pw, preferred_element_type=jnp.float32)
            y = jnp.maximum(y, 0.0)
            scr_ref[r0:r0 + g, :, :] = y.reshape(g, Wp_pad, CP)

        for r0 in range(0, in_rows_blk, pw_chunk_rows):
            g = min(pw_chunk_rows, in_rows_blk - r0)
            pw_rows(xa_ref[0, r0:r0 + g, :, :], r0, g)
        pw_rows(xb_ref[0, :, :, :], in_rows_blk, halo_fetch)

        # ---- depthwise KxK conv, per 128-lane channel group -----------------
        for cg in range(n_cg):
            l0 = cg * 128
            c_hi = min(l0 + 128, C_store)
            # Loop-invariant taps: read & cast once per lane group (hoisted).
            taps = [dw_ref[t:t + 1, l0:l0 + 128].astype(jnp.float32)
                    for t in range(K * K)]
            for w0 in range(0, Wout, TW):              # bound acc vregs (<=TW)
                tw = min(TW, Wout - w0)
                acc = jnp.zeros((TR, tw, 128), jnp.float32)
                if stride == 1:
                    for ky in range(K):
                        # One wide load per ky; kx shifts are register slices.
                        wide = scr_ref[ky * dilation: ky * dilation + TR,
                                       w0: w0 + tw + halo_w,
                                       l0: l0 + 128]
                        for kx in range(K):
                            win = wide[:, kx * dilation: kx * dilation + tw, :]
                            acc = acc + win * taps[ky * K + kx]
                else:
                    for ky in range(K):
                        for kx in range(K):
                            win = scr_ref[
                                pl.ds(ky * dilation, TR, stride=stride),
                                pl.ds(w0 * stride + kx * dilation, tw,
                                      stride=stride),
                                l0: l0 + 128]
                            acc = acc + win * taps[ky * K + kx]
                if c_hi > l0:
                    o_ref[0, :, w0:w0 + tw, l0:c_hi] = (
                        acc[:, :, :c_hi - l0].astype(o_ref.dtype))

    return kernel


@functools.partial(jax.jit, static_argnames=("stride", "padding", "dilation"))
def separable_conv2d(x_nchw, pw_weight, dw_weight, *, stride=1, padding=0,
                     dilation=1):
    """x_nchw: (N, Cin, H, W); pw_weight: (Cout, Cin, 1, 1);
    dw_weight: (Cout, 1, K, K).  Returns (N, Cout, Hout, Wout)."""
    N, Cin, H, W = x_nchw.shape
    Cout = pw_weight.shape[0]
    K = dw_weight.shape[-1]
    Hout = (H + 2 * padding - dilation * (K - 1) - 1) // stride + 1
    Wout = (W + 2 * padding - dilation * (K - 1) - 1) // stride + 1

    dtype = x_nchw.dtype
    itemsize = jnp.dtype(dtype).itemsize

    CP = _round_up(Cout, 128)                     # lane-dense internal width
    # Output channel width written to HBM: avoid CP-padding waste for small Cout.
    C_store = Cout if (Cout <= 128 or Cout % 128 == 0) else CP

    halo = (K - 1) * dilation
    halo_need = max(halo - (stride - 1), 0)       # rows needed beyond a block
    TR = 8                                        # output rows per grid strip
    while TR * stride < max(halo_need, 1):
        TR += 8
    in_rows_blk = TR * stride
    halo_fetch = max(halo_need, 1)
    while in_rows_blk % halo_fetch:               # must divide for view-B spec
        halo_fetch += 1
    scr_rows = in_rows_blk + halo_fetch

    n_strips = pl.cdiv(Hout, TR)
    Hout_pad = n_strips * TR                      # remainder rows sliced off

    Wp = W + 2 * padding
    Wp_pad = _round_up(Wp, 8)                     # sublane-aligned columns
    TW = min(16, Wout)                            # depthwise Wout chunk

    R_total = max(n_strips * in_rows_blk + halo_fetch, H + padding)

    # Zero-padded NHWC input: pointwise(0)=0 and ReLU(0)=0, so the spatial
    # zero halo of the *intermediate* is produced automatically.
    x_nhwc = jnp.transpose(x_nchw, (0, 2, 3, 1))
    x_pad = jnp.zeros((N, R_total, Wp_pad, Cin), dtype)
    x_pad = x_pad.at[:, padding:padding + H, padding:padding + W, :].set(x_nhwc)

    pw = jnp.zeros((Cin, CP), dtype).at[:, :Cout].set(
        jnp.transpose(pw_weight.reshape(Cout, Cin), (1, 0)).astype(dtype))
    dw = jnp.zeros((K * K, CP), dtype).at[:, :Cout].set(
        jnp.transpose(dw_weight.reshape(Cout, K * K), (1, 0)).astype(dtype))

    # MXU M-chunk of >= ~512 rows (whole scratch rows so stores stay aligned).
    pw_chunk_rows = max(1, min(in_rows_blk, -(-512 // Wp_pad)))
    # TODO(synk): for Cin <= 8 a VPU broadcast-FMA pointwise would beat the
    # MXU (contraction depth is tiny); kept on the MXU for simplicity.

    kernel = _make_kernel(
        Cin=Cin, CP=CP, C_store=C_store, K=K, stride=stride, dilation=dilation,
        Wp_pad=Wp_pad, Wout=Wout, TR=TR, TW=TW, in_rows_blk=in_rows_blk,
        halo_fetch=halo_fetch, scr_rows=scr_rows, pw_chunk_rows=pw_chunk_rows)

    rb_ratio = in_rows_blk // halo_fetch

    # VMEM budget (scratch + double-buffered blocks, lane/sublane padded),
    # clamped for v7x's 64 MiB per-TC VMEM.
    est_bytes = (scr_rows * Wp_pad * CP * 4
                 + 2 * in_rows_blk * Wp_pad * 128 * itemsize
                 + 2 * halo_fetch * Wp_pad * 128 * itemsize
                 + 2 * TR * _round_up(Wout, 8) * _round_up(C_store, 128) * itemsize
                 + _round_up(Cin, 8) * CP * itemsize
                 + _round_up(K * K, 8) * CP * itemsize)
    vmem_limit = int(min(48 * 2**20, max(24 * 2**20, 2 * est_bytes)))

    flops = (2 * N * n_strips * scr_rows * Wp_pad * Cin * CP
             + 2 * N * Hout_pad * Wout * CP * K * K)
    bytes_accessed = itemsize * (
        N * n_strips * (in_rows_blk + halo_fetch) * Wp_pad * Cin
        + Cin * CP + K * K * CP
        + N * Hout_pad * Wout * C_store)

    out = pl.pallas_call(
        kernel,
        out_shape=jax.ShapeDtypeStruct((N, Hout_pad, Wout, C_store), dtype),
        grid_spec=pltpu.PrefetchScalarGridSpec(
            num_scalar_prefetch=0,
            grid=(N, n_strips),
            in_specs=[
                # Fresh strip rows.
                pl.BlockSpec((1, in_rows_blk, Wp_pad, Cin),
                             lambda n, s: (n, s, 0, 0)),
                # Bottom-halo rows = leading rows of the next block (shifted view).
                pl.BlockSpec((1, halo_fetch, Wp_pad, Cin),
                             lambda n, s: (n, (s + 1) * rb_ratio, 0, 0)),
                # Constant weights: single-buffered.
                pl.BlockSpec((Cin, CP), lambda n, s: (0, 0),
                             pipeline_mode=pl.Buffered(1)),
                pl.BlockSpec((K * K, CP), lambda n, s: (0, 0),
                             pipeline_mode=pl.Buffered(1)),
            ],
            out_specs=pl.BlockSpec((1, TR, Wout, C_store),
                                   lambda n, s: (n, s, 0, 0)),
            scratch_shapes=[pltpu.VMEM((scr_rows, Wp_pad, CP), jnp.float32)],
        ),
        compiler_params=pltpu.CompilerParams(
            dimension_semantics=("parallel", "parallel"),
            vmem_limit_bytes=vmem_limit),
        cost_estimate=pl.CostEstimate(flops=flops, transcendentals=0,
                                      bytes_accessed=bytes_accessed),
    )(x_pad, x_pad, pw, dw)

    if C_store > Cout:
        out = out[..., :Cout]
    if Hout_pad > Hout:
        out = out[:, :Hout]
    return jnp.transpose(out, (0, 3, 1, 2))             # back to NCHW


def _reference(x_nchw, pw_weight, dw_weight, *, stride, padding, dilation):
    Cout = pw_weight.shape[0]
    y = lax.conv_general_dilated(
        x_nchw, pw_weight, window_strides=(1, 1), padding="VALID",
        dimension_numbers=("NCHW", "OIHW", "NCHW"))
    y = jnp.maximum(y, 0.0)
    out = lax.conv_general_dilated(
        y, dw_weight, window_strides=(stride, stride),
        padding=[(padding, padding), (padding, padding)],
        rhs_dilation=(dilation, dilation),
        dimension_numbers=("NCHW", "OIHW", "NCHW"),
        feature_group_count=Cout)
    return out


if __name__ == "__main__":
    # Module config: SeparableConv2d(in=4, out=8, kernel_size=3, stride=1,
    #                                padding=1, dilation=1, bias=False)
    N, Cin, H, W = 2, 4, 16, 16
    Cout, K, stride, padding, dilation = 8, 3, 1, 1, 1

    key = jax.random.PRNGKey(0)
    kx, kpw, kdw = jax.random.split(key, 3)
    x = jax.random.normal(kx, (N, Cin, H, W), dtype=jnp.float32)
    # Deterministic synthetic weights matching nn.Conv2d parameter shapes.
    pw_weight = jax.random.normal(kpw, (Cout, Cin, 1, 1), dtype=jnp.float32) * 0.1
    dw_weight = jax.random.normal(kdw, (Cout, 1, K, K), dtype=jnp.float32) * 0.1

    out = separable_conv2d(x, pw_weight, dw_weight,
                           stride=stride, padding=padding, dilation=dilation)
    out = jax.block_until_ready(out)

    ref = _reference(x, pw_weight, dw_weight,
                     stride=stride, padding=padding, dilation=dilation)
    assert out.shape == ref.shape, (out.shape, ref.shape)
    assert jnp.allclose(out, ref, atol=1e-4, rtol=1e-4), float(
        jnp.max(jnp.abs(out - ref)))

    print("KERNEL_OK")
</pallas_src>

<mosaic_0001>
module attributes {stable_mosaic.version = 11 : i64} {
  func.func @kernel(%arg0: i32, %arg1: i32, %arg2: memref<1x8x24x4xf32, #tpu.memory_space<vmem>>, %arg3: memref<1x2x24x4xf32, #tpu.memory_space<vmem>>, %arg4: memref<4x128xf32, #tpu.memory_space<vmem>>, %arg5: memref<9x128xf32, #tpu.memory_space<vmem>>, %arg6: memref<1x8x16x8xf32, #tpu.memory_space<vmem>>, %arg7: memref<10x24x128xf32, #tpu.memory_space<vmem>>) attributes {dimension_semantics = [#tpu.dimension_semantics<parallel>, #tpu.dimension_semantics<parallel>], iteration_bounds = array<i64: 2, 2>, scalar_prefetch = 0 : i64, scratch_operands = 1 : i64, tpu.core_type = #tpu.core_type<tc>, window_params = [{transform_indices = @transform_0, window_bounds = array<i64: 1, 8, 24, 4>}, {transform_indices = @transform_1, window_bounds = array<i64: 1, 2, 24, 4>}, {pipeline_mode = #tpu.pipeline_mode<synchronous>, transform_indices = @transform_2, window_bounds = array<i64: 4, 128>}, {pipeline_mode = #tpu.pipeline_mode<synchronous>, transform_indices = @transform_3, window_bounds = array<i64: 9, 128>}, {transform_indices = @transform_4, window_bounds = array<i64: 1, 8, 16, 8>}]} {
    %c0 = arith.constant 0 : index
    %c0_0 = arith.constant 0 : index
    %0 = vector.load %arg4[%c0, %c0_0] : memref<4x128xf32, #tpu.memory_space<vmem>>, vector<4x128xf32>
    %c0_1 = arith.constant 0 : index
    %c0_2 = arith.constant 0 : index
    %c0_3 = arith.constant 0 : index
    %c0_4 = arith.constant 0 : index
    %1 = vector.load %arg2[%c0_1, %c0_2, %c0_3, %c0_4] : memref<1x8x24x4xf32, #tpu.memory_space<vmem>>, vector<1x8x24x4xf32>
    %2 = vector.shape_cast %1 : vector<1x8x24x4xf32> to vector<8x24x4xf32>
    %3 = vector.shape_cast %2 : vector<8x24x4xf32> to vector<192x4xf32>
    %cst = arith.constant dense<0.000000e+00> : vector<192x128xf32>
    %4 = tpu.matmul %3, %0, %cst {dimension_numbers = #tpu.dot_dimension_numbers<[1], [0], [0], [1], [0, 0, 1, 1], [], []>} : vector<192x4xf32>, vector<4x128xf32>, vector<192x128xf32> -> vector<192x128xf32>
    %cst_5 = arith.constant 0.000000e+00 : f32
    %5 = vector.broadcast %cst_5 : f32 to vector<192x128xf32>
    %6 = arith.maximumf %4, %5 : vector<192x128xf32>
    %7 = vector.shape_cast %6 : vector<192x128xf32> to vector<8x24x128xf32>
    %c0_6 = arith.constant 0 : index
    %c0_7 = arith.constant 0 : index
    %c0_8 = arith.constant 0 : index
    %8 = vector.load %arg7[%c0_6, %c0_7, %c0_8] : memref<10x24x128xf32, #tpu.memory_space<vmem>>, vector<8x24x128xf32>
    tpu.vector_store %arg7[%c0_6, %c0_7, %c0_8], %7 {strides = array<i32>} : memref<10x24x128xf32, #tpu.memory_space<vmem>>, vector<8x24x128xf32>,
    %c0_9 = arith.constant 0 : index
    %c0_10 = arith.constant 0 : index
    %c0_11 = arith.constant 0 : index
    %c0_12 = arith.constant 0 : index
    %9 = vector.load %arg3[%c0_9, %c0_10, %c0_11, %c0_12] : memref<1x2x24x4xf32, #tpu.memory_space<vmem>>, vector<1x2x24x4xf32>
    %10 = vector.shape_cast %9 : vector<1x2x24x4xf32> to vector<2x24x4xf32>
    %11 = vector.shape_cast %10 : vector<2x24x4xf32> to vector<48x4xf32>
    %cst_13 = arith.constant dense<0.000000e+00> : vector<48x128xf32>
    %12 = tpu.matmul %11, %0, %cst_13 {dimension_numbers = #tpu.dot_dimension_numbers<[1], [0], [0], [1], [0, 0, 1, 1], [], []>} : vector<48x4xf32>, vector<4x128xf32>, vector<48x128xf32> -> vector<48x128xf32>
    %cst_14 = arith.constant 0.000000e+00 : f32
    %13 = vector.broadcast %cst_14 : f32 to vector<48x128xf32>
    %14 = arith.maximumf %12, %13 : vector<48x128xf32>
    %15 = vector.shape_cast %14 : vector<48x128xf32> to vector<2x24x128xf32>
    %c8 = arith.constant 8 : index
    %c0_15 = arith.constant 0 : index
    %c0_16 = arith.constant 0 : index
    %16 = vector.load %arg7[%c8, %c0_15, %c0_16] : memref<10x24x128xf32, #tpu.memory_space<vmem>>, vector<2x24x128xf32>
    tpu.vector_store %arg7[%c8, %c0_15, %c0_16], %15 {strides = array<i32>} : memref<10x24x128xf32, #tpu.memory_space<vmem>>, vector<2x24x128xf32>,
    %c0_17 = arith.constant 0 : index
    %c0_18 = arith.constant 0 : index
    %17 = vector.load %arg5[%c0_17, %c0_18] : memref<9x128xf32, #tpu.memory_space<vmem>>, vector<1x128xf32>
    %c1 = arith.constant 1 : index
    %c0_19 = arith.constant 0 : index
    %18 = vector.load %arg5[%c1, %c0_19] : memref<9x128xf32, #tpu.memory_space<vmem>>, vector<1x128xf32>
    %c2 = arith.constant 2 : index
    %c0_20 = arith.constant 0 : index
    %19 = vector.load %arg5[%c2, %c0_20] : memref<9x128xf32, #tpu.memory_space<vmem>>, vector<1x128xf32>
    %c3 = arith.constant 3 : index
    %c0_21 = arith.constant 0 : index
    %20 = vector.load %arg5[%c3, %c0_21] : memref<9x128xf32, #tpu.memory_space<vmem>>, vector<1x128xf32>
    %c4 = arith.constant 4 : index
    %c0_22 = arith.constant 0 : index
    %21 = vector.load %arg5[%c4, %c0_22] : memref<9x128xf32, #tpu.memory_space<vmem>>, vector<1x128xf32>
    %c5 = arith.constant 5 : index
    %c0_23 = arith.constant 0 : index
    %22 = vector.load %arg5[%c5, %c0_23] : memref<9x128xf32, #tpu.memory_space<vmem>>, vector<1x128xf32>
    %c6 = arith.constant 6 : index
    %c0_24 = arith.constant 0 : index
    %23 = vector.load %arg5[%c6, %c0_24] : memref<9x128xf32, #tpu.memory_space<vmem>>, vector<1x128xf32>
    %c7 = arith.constant 7 : index
    %c0_25 = arith.constant 0 : index
    %24 = vector.load %arg5[%c7, %c0_25] : memref<9x128xf32, #tpu.memory_space<vmem>>, vector<1x128xf32>
    %c8_26 = arith.constant 8 : index
    %c0_27 = arith.constant 0 : index
    %25 = vector.load %arg5[%c8_26, %c0_27] : memref<9x128xf32, #tpu.memory_space<vmem>>, vector<1x128xf32>
    %cst_28 = arith.constant 0.000000e+00 : f32
    %26 = vector.broadcast %cst_28 : f32 to vector<8x16x128xf32>
    %c0_29 = arith.constant 0 : index
    %c0_30 = arith.constant 0 : index
    %c0_31 = arith.constant 0 : index
    %27 = vector.load %arg7[%c0_29, %c0_30, %c0_31] : memref<10x24x128xf32, #tpu.memory_space<vmem>>, vector<8x18x128xf32>
    %28 = vector.extract_strided_slice %27 {offsets = [0, 0, 0], sizes = [8, 16, 128], strides = [1, 1, 1]} : vector<8x18x128xf32> to vector<8x16x128xf32>
    %29 = vector.shape_cast %17 : vector<1x128xf32> to vector<1x1x128xf32>
    %30 = vector.broadcast %29 : vector<1x1x128xf32> to vector<8x16x128xf32>
    %31 = arith.mulf %28, %30 : vector<8x16x128xf32>
    %32 = arith.addf %26, %31 : vector<8x16x128xf32>
    %33 = vector.extract_strided_slice %27 {offsets = [0, 1, 0], sizes = [8, 16, 128], strides = [1, 1, 1]} : vector<8x18x128xf32> to vector<8x16x128xf32>
    %34 = vector.shape_cast %18 : vector<1x128xf32> to vector<1x1x128xf32>
    %35 = vector.broadcast %34 : vector<1x1x128xf32> to vector<8x16x128xf32>
    %36 = arith.mulf %33, %35 : vector<8x16x128xf32>
    %37 = arith.addf %32, %36 : vector<8x16x128xf32>
    %38 = vector.extract_strided_slice %27 {offsets = [0, 2, 0], sizes = [8, 16, 128], strides = [1, 1, 1]} : vector<8x18x128xf32> to vector<8x16x128xf32>
    %39 = vector.shape_cast %19 : vector<1x128xf32> to vector<1x1x128xf32>
    %40 = vector.broadcast %39 : vector<1x1x128xf32> to vector<8x16x128xf32>
    %41 = arith.mulf %38, %40 : vector<8x16x128xf32>
    %42 = arith.addf %37, %41 : vector<8x16x128xf32>
    %c1_32 = arith.constant 1 : index
    %c0_33 = arith.constant 0 : index
    %c0_34 = arith.constant 0 : index
    %43 = vector.load %arg7[%c1_32, %c0_33, %c0_34] : memref<10x24x128xf32, #tpu.memory_space<vmem>>, vector<8x18x128xf32>
    %44 = vector.extract_strided_slice %43 {offsets = [0, 0, 0], sizes = [8, 16, 128], strides = [1, 1, 1]} : vector<8x18x128xf32> to vector<8x16x128xf32>
    %45 = vector.shape_cast %20 : vector<1x128xf32> to vector<1x1x128xf32>
    %46 = vector.broadcast %45 : vector<1x1x128xf32> to vector<8x16x128xf32>
    %47 = arith.mulf %44, %46 : vector<8x16x128xf32>
    %48 = arith.addf %42, %47 : vector<8x16x128xf32>
    %49 = vector.extract_strided_slice %43 {offsets = [0, 1, 0], sizes = [8, 16, 128], strides = [1, 1, 1]} : vector<8x18x128xf32> to vector<8x16x128xf32>
    %50 = vector.shape_cast %21 : vector<1x128xf32> to vector<1x1x128xf32>
    %51 = vector.broadcast %50 : vector<1x1x128xf32> to vector<8x16x128xf32>
    %52 = arith.mulf %49, %51 : vector<8x16x128xf32>
    %53 = arith.addf %48, %52 : vector<8x16x128xf32>
    %54 = vector.extract_strided_slice %43 {offsets = [0, 2, 0], sizes = [8, 16, 128], strides = [1, 1, 1]} : vector<8x18x128xf32> to vector<8x16x128xf32>
    %55 = vector.shape_cast %22 : vector<1x128xf32> to vector<1x1x128xf32>
    %56 = vector.broadcast %55 : vector<1x1x128xf32> to vector<8x16x128xf32>
    %57 = arith.mulf %54, %56 : vector<8x16x128xf32>
    %58 = arith.addf %53, %57 : vector<8x16x128xf32>
    %c2_35 = arith.constant 2 : index
    %c0_36 = arith.constant 0 : index
    %c0_37 = arith.constant 0 : index
    %59 = vector.load %arg7[%c2_35, %c0_36, %c0_37] : memref<10x24x128xf32, #tpu.memory_space<vmem>>, vector<8x18x128xf32>
    %60 = vector.extract_strided_slice %59 {offsets = [0, 0, 0], sizes = [8, 16, 128], strides = [1, 1, 1]} : vector<8x18x128xf32> to vector<8x16x128xf32>
    %61 = vector.shape_cast %23 : vector<1x128xf32> to vector<1x1x128xf32>
    %62 = vector.broadcast %61 : vector<1x1x128xf32> to vector<8x16x128xf32>
    %63 = arith.mulf %60, %62 : vector<8x16x128xf32>
    %64 = arith.addf %58, %63 : vector<8x16x128xf32>
    %65 = vector.extract_strided_slice %59 {offsets = [0, 1, 0], sizes = [8, 16, 128], strides = [1, 1, 1]} : vector<8x18x128xf32> to vector<8x16x128xf32>
    %66 = vector.shape_cast %24 : vector<1x128xf32> to vector<1x1x128xf32>
    %67 = vector.broadcast %66 : vector<1x1x128xf32> to vector<8x16x128xf32>
    %68 = arith.mulf %65, %67 : vector<8x16x128xf32>
    %69 = arith.addf %64, %68 : vector<8x16x128xf32>
    %70 = vector.extract_strided_slice %59 {offsets = [0, 2, 0], sizes = [8, 16, 128], strides = [1, 1, 1]} : vector<8x18x128xf32> to vector<8x16x128xf32>
    %71 = vector.shape_cast %25 : vector<1x128xf32> to vector<1x1x128xf32>
    %72 = vector.broadcast %71 : vector<1x1x128xf32> to vector<8x16x128xf32>
    %73 = arith.mulf %70, %72 : vector<8x16x128xf32>
    %74 = arith.addf %69, %73 : vector<8x16x128xf32>
    %75 = vector.extract_strided_slice %74 {offsets = [0, 0, 0], sizes = [8, 16, 8], strides = [1, 1, 1]} : vector<8x16x128xf32> to vector<8x16x8xf32>
    %c0_38 = arith.constant 0 : index
    %c0_39 = arith.constant 0 : index
    %c0_40 = arith.constant 0 : index
    %c0_41 = arith.constant 0 : index
    %76 = vector.load %arg6[%c0_38, %c0_39, %c0_40, %c0_41] : memref<1x8x16x8xf32, #tpu.memory_space<vmem>>, vector<1x8x16x8xf32>
    %77 = vector.shape_cast %76 : vector<1x8x16x8xf32> to vector<8x16x8xf32>
    %78 = vector.shape_cast %75 : vector<8x16x8xf32> to vector<1x8x16x8xf32>
    tpu.vector_store %arg6[%c0_38, %c0_39, %c0_40, %c0_41], %78 {strides = array<i32>} : memref<1x8x16x8xf32, #tpu.memory_space<vmem>>, vector<1x8x16x8xf32>,
    return
  }
  func.func @transform_0(%arg0: i32, %arg1: i32) -> (i32, i32, i32, i32) {
    %c0_i32 = arith.constant 0 : i32
    %c0_i32_0 = arith.constant 0 : i32
    %c0_i32_1 = arith.constant 0 : i32
    return %arg0, %arg1, %c0_i32, %c0_i32_0 : i32, i32, i32, i32
  }
  func.func @transform_1(%arg0: i32, %arg1: i32) -> (i32, i32, i32, i32) {
    %c1_i32 = arith.constant 1 : i32
    %0 = arith.addi %arg1, %c1_i32 : i32
    %c4_i32 = arith.constant 4 : i32
    %1 = arith.muli %0, %c4_i32 : i32
    %c0_i32 = arith.constant 0 : i32
    %c0_i32_0 = arith.constant 0 : i32
    %c0_i32_1 = arith.constant 0 : i32
    return %arg0, %1, %c0_i32, %c0_i32_0 : i32, i32, i32, i32
  }
  func.func @transform_2(%arg0: i32, %arg1: i32) -> (i32, i32) {
    %c0_i32 = arith.constant 0 : i32
    %c0_i32_0 = arith.constant 0 : i32
    %c0_i32_1 = arith.constant 0 : i32
    return %c0_i32, %c0_i32_0 : i32, i32
  }
  func.func @transform_3(%arg0: i32, %arg1: i32) -> (i32, i32) {
    %c0_i32 = arith.constant 0 : i32
    %c0_i32_0 = arith.constant 0 : i32
    %c0_i32_1 = arith.constant 0 : i32
    return %c0_i32, %c0_i32_0 : i32, i32
  }
  func.func @transform_4(%arg0: i32, %arg1: i32) -> (i32, i32, i32, i32) {
    %c0_i32 = arith.constant 0 : i32
    %c0_i32_0 = arith.constant 0 : i32
    %c0_i32_1 = arith.constant 0 : i32
    return %arg0, %arg1, %c0_i32, %c0_i32_0 : i32, i32, i32, i32
  }
}

</mosaic_0001>

<bundles_post_ra>
// kernel: separable_conv2d.1
= control target key start
LH: loop header
LB: loop body
LE: loop exit
PB: predicated region body
PF: predicated region fallthrough
CT: control target
= control target key end

     0   :  { %s2130_s15 = smov 0   ;;  %s2132_s16 = smov 0   ;;  %s3234_s0 = inlined_call_operand.vmem [shape: f32[2,18,24,4], index: 0, kind: input, shape index: {}, may-alias: {0,1}]   ;;  %s3235_s1 = inlined_call_operand.vmem [shape: f32[2,18,24,4], index: 1, kind: input, shape index: {}, may-alias: {0,1}]   ;;  %s3236_s2 = inlined_call_operand.vmem [shape: f32[4,128], index: 2, kind: input, shape index: {}]   ;;  %s3237_s3 = inlined_call_operand.vmem [shape: f32[9,128], index: 3, kind: input, shape index: {}]   ;;  %s3238_s4 = inlined_call_operand.vmem [shape: f32[2,16,16,8], index: 4, kind: output, shape index: {}]  }
   0x1   :  { %s2134_s17 = smov 0   ;;  %s2136_s18 = smov 0  }
   0x2   :  { %s2138_s19 = smov 0  }
   0x3 LB: > { %s23_s20 = sadd.s32 1, %s2095_s17  ;;  %s26_s21 = sadd.s32 1, %s2099_s18  ;;  %s2103_s19 = sphi %s2138_s19, %s14_s19   ;;  %s2099_s18 = sphi %s2136_s18, %s3371_s18   ;;  %s2095_s17 = sphi %s2134_s17, %s3370_s17   ;;  %s2091_s16 = sphi %s2132_s16, %s3369_s16   ;;  %s2087_s15 = sphi %s2130_s15, %s3368_s15  }
   0x4   : > { %p24_p0 = scmp.ge.s32.totalorder %s23_s20, 2  ;;  %p1867_p1 = scmp.ge.s32.totalorder %s2103_s19, 1 }
   0x5   : > { %p220_p2 = scmp.lt.s32.totalorder %s2103_s19, 5 }
   0x6   : > { %s3373_s20 = smov (%p24_p0, %s23_s20), 0  ;;  %s3375_s21 = smov (!%p24_p0, %s26_s21), %s2099_s18 }
   0x7   : > { %p221_p3 = pnand %p1867_p1, %p220_p2  ;;  %p28_p4 = scmp.ge.s32.totalorder %s3375_s21, 2 }
   0x9   : > { %s3377_s21 = smov (%p28_p4, %s3375_s21), 0  ;;  %224 = sbr.rel (%p221_p3) target bundleno = 380 (0x17c), region = 36 }
   0xe   : > { %v320_v0 = vld [vmem:[%s3236_s2] sm:$0xf]  ;;  %vm418_vm0 = vcmask 1043456   ;;  %s2163_s24 = sshll.u32 %s2087_s15, 3  ;;  %p279_p5 = scmp.lt.s32.totalorder %s2091_s16, 1  ;;  %vm345_vm1 = vcmask 31744  }
   0xf   : > { %1961 = vmatprep.subr.msk.mxu0 %vm418_vm0, %v320_v0  ;;  %p281_p6 = scmp.lt.s32.totalorder %s2163_s24, 17  ;;  %2010 = vmatprep.subr.msk.mxu1 %vm418_vm0, %v320_v0  ;;  %s1928_s25 = sadd.s32 8, %s2163_s24  ;;  %v2242_v33 = vld [vmem:[%s3237_s3 + $0x1] ss:$0 sm:$0xff]  ;;  %v2252_v42 = vld [vmem:[%s3237_s3 + $0x2] ss:$0 sm:$0xff] }
  0x10   : > { %1962 = vmatpush3.msk.msra.mxu0 %vm418_vm0, %v320_v0  ;;  %s3379_s16 = smov (!%p279_p5, %s2091_s16), 1  ;;  %2011 = vmatpush3.msk.msra.mxu1 %vm418_vm0, %v320_v0  ;;  %p299_p7 = scmp.lt.s32.totalorder %s1928_s25, 17  ;;  %vm908_vm2 = vcmask 1046528   ;;  %v2259_v49 = vld [vmem:[%s3237_s3] ss:$0 sm:$0xff]  ;;  %vm1033_vm3 = vcmask 1045504  }
  0x11   : > { %s282_s26 = scalar_select %p281_p6, %s2163_s24, 17  ;;  %1999 = vmatprep.subr.msk.mxu1 %vm418_vm0, %v320_v0  ;;  %v2279_v57 = vld [vmem:[%s3237_s3 + $0x3] ss:$0 sm:$0xff]  ;;  %v2288_v61 = vld [vmem:[%s3237_s3 + $0x4] ss:$0 sm:$0xff]  ;;  %vm1724_vm4 = vcmask 64512  }
  0x12   : > { %s2013_s27 = smul.u32 54, %s3379_s16  ;;  %s3381_s25 = smov (!%p299_p7, %s1928_s25), 17  ;;  %v2293_v62 = vld [vmem:[%s3237_s3 + $0x5] ss:$0 sm:$0xff] }
  0x13   : > { %s2012_s28 = smul.u32 3, %s282_s26  ;;  %p312_p8 = scmp.lt.s32.totalorder %s2163_s24, 15 }
  0x14   : > { %s2014_s8 = smul.u32 3, %s3381_s25  ;;  %s1875_s14 = sshll.u32 %s3379_s16, 5 }
  0x15   : > { %s285_s29 = sadd.s32 %s2013_s27, %s2012_s28  ;;  %s3383_s24 = smov (!%p312_p8, %s2163_s24), 15 }
  0x16   : > { %s1869_s30 = sshll.u32 %s285_s29, 3  ;;  %s303_s9 = sadd.s32 %s2014_s8, %s2013_s27 }
  0x17   : > { %s2179_s7 = scalar_lea.vmem %s3234_s0, %s1869_s30  ;;  %s1872_s10 = sshll.u32 %s303_s9, 3 }
  0x18   : > { %v321_v1 = vld [vmem:[%s2179_s7] sm:$0xff]  ;;  %v322_v2 = vld [vmem:[%s2179_s7 + $0x8] sm:$0xff]  ;;  %v323_v3 = vld [vmem:[%s2179_s7 + $0x10] sm:$0xff]  ;;  %s305_s13 = scalar_lea.vmem %s3235_s1, %s1872_s10 }
  0x19   : > { %1963 = vmatprep.mubr.msk.f32.mxu0 %vm345_vm1, %v321_v1  ;;  %v337_v4 = vld [vmem:[%s2179_s7 + $0x80] sm:$0xff]  ;;  %v338_v5 = vld [vmem:[%s2179_s7 + $0x88] sm:$0xff]  ;;  %v339_v6 = vld [vmem:[%s2179_s7 + $0x90] sm:$0xff] }
  0x1a   : > { %1964 = vmatmul.mubr.msk.f32.vlgmr.msra.gmra.mxu0 %vm345_vm1, %v322_v2  ;;  %1987 = vmatprep.mubr.msk.f32.mxu1 %vm345_vm1, %v337_v4  ;;  %v324_v7 = vld [vmem:[%s2179_s7 + $0x18] sm:$0xff]  ;;  %v325_v8 = vld [vmem:[%s2179_s7 + $0x20] sm:$0xff]  ;;  %v326_v11 = vld [vmem:[%s2179_s7 + $0x28] sm:$0xff] }
  0x1b   : > { %1966 = vmatprep.mubr.msk.f32.mxu0 %vm345_vm1, %v323_v3  ;;  %1988 = vmatmul.mubr.msk.f32.vlgmr.msra.gmra.mxu1 %vm345_vm1, %v338_v5  ;;  %v340_v9 = vld [vmem:[%s2179_s7 + $0x98] sm:$0xff]  ;;  %v341_v10 = vld [vmem:[%s2179_s7 + $0xa0] sm:$0xff]  ;;  %v327_v12 = vld [vmem:[%s2179_s7 + $0x30] sm:$0xff] }
  0x1c   : > { %1990 = vmatprep.mubr.msk.f32.mxu1 %vm345_vm1, %v339_v6  ;;  %2000 = vmatpush3.msk.msra.mxu1 %vm418_vm0, %v320_v0  ;;  %v342_v13 = vld [vmem:[%s2179_s7 + $0xa8] sm:$0xff]  ;;  %v343_v14 = vld [vmem:[%s2179_s7 + $0xb0] sm:$0xff]  ;;  %v328_v15 = vld [vmem:[%s2179_s7 + $0x38] sm:$0xff] }
  0x1d   : > { %v329_v16 = vld [vmem:[%s2179_s7 + $0x40] sm:$0xff]  ;;  %v344_v17 = vld [vmem:[%s2179_s7 + $0xb8] sm:$0xff]  ;;  %v330_v19 = vld [vmem:[%s2179_s7 + $0x48] sm:$0xff] }
  0x1e   : > { %1967 = vmatmul.mubr.msk.f32.gmra.mxu0 %vm345_vm1, %v324_v7  ;;  %v655_v18 = vld [vmem:[%s305_s13] sm:$0xff]  ;;  %v331_v20 = vld [vmem:[%s2179_s7 + $0x50] sm:$0xff]  ;;  %v656_v21 = vld [vmem:[%s305_s13 + $0x8] sm:$0xff] }
  0x1f   : > { %1969 = vmatprep.mubr.msk.f32.mxu0 %vm345_vm1, %v325_v8  ;;  %1991 = vmatmul.mubr.msk.f32.gmra.mxu1 %vm345_vm1, %v340_v9  ;;  %v657_v22 = vld [vmem:[%s305_s13 + $0x10] sm:$0xff]  ;;  %v332_v23 = vld [vmem:[%s2179_s7 + $0x58] sm:$0xff]  ;;  %v333_v24 = vld [vmem:[%s2179_s7 + $0x60] sm:$0xff] }
  0x20   : > { %1993 = vmatprep.mubr.msk.f32.mxu1 %vm345_vm1, %v341_v10  ;;  %v658_v25 = vld [vmem:[%s305_s13 + $0x18] sm:$0xff]  ;;  %v659_v26 = vld [vmem:[%s305_s13 + $0x20] sm:$0xff]  ;;  %v334_v27 = vld [vmem:[%s2179_s7 + $0x68] sm:$0xff] }
  0x21   : > { %v335_v28 = vld [vmem:[%s2179_s7 + $0x70] sm:$0xff]  ;;  %v660_v29 = vld [vmem:[%s305_s13 + $0x28] sm:$0xff]  ;;  %v336_v30 = vld [vmem:[%s2179_s7 + $0x78] sm:$0xff]  ;;  %s1874_s13 = sshll.u32 %s3383_s24, 1 }
  0x22   : > { %1970 = vmatmul.mubr.msk.f32.gmra.mxu0 %vm345_vm1, %v326_v11  ;;  %s2600_s16 = sadd.s32 %s1875_s14, %s1874_s13 }
  0x23   : > { %1972 = vmatprep.mubr.msk.f32.mxu0 %vm345_vm1, %v327_v12  ;;  %1994 = vmatmul.mubr.msk.f32.gmra.mxu1 %vm345_vm1, %v342_v13  ;;  %s1876_s24 = sshll.u32 %s2600_s16, 3 }
  0x24   : > { %1996 = vmatprep.mubr.msk.f32.mxu1 %vm345_vm1, %v343_v14  ;;  %s2639_s23 = scalar_lea.vmem %s3238_s4, %s1876_s24 }
  0x26   : > { %1973 = vmatmul.mubr.msk.f32.gmra.mxu0 %vm345_vm1, %v328_v15 }
  0x27   : > { %1975 = vmatprep.mubr.msk.f32.mxu0 %vm345_vm1, %v329_v16  ;;  %1997 = vmatmul.mubr.msk.f32.gmra.mxu1 %vm345_vm1, %v344_v17 }
  0x28   : > { %2001 = vmatprep.mubr.msk.f32.mxu1 %vm345_vm1, %v655_v18 }
  0x2a   : > { %1976 = vmatmul.mubr.msk.f32.gmra.mxu0 %vm345_vm1, %v330_v19  ;;  %v2329_v19 = vld [vmem:[%s3237_s3 + $0x7] ss:$0 sm:$0xff] }
  0x2b   : > { %1978 = vmatprep.mubr.msk.f32.mxu0 %vm345_vm1, %v331_v20  ;;  %2002 = vmatmul.mubr.msk.f32.vlgmr.msra.gmra.mxu1 %vm345_vm1, %v656_v21 }
  0x2c   : > { %2004 = vmatprep.mubr.msk.f32.mxu1 %vm345_vm1, %v657_v22 }
  0x2e   : > { %1979 = vmatmul.mubr.msk.f32.gmra.mxu0 %vm345_vm1, %v332_v23 }
  0x2f   : > { %1981 = vmatprep.mubr.msk.f32.mxu0 %vm345_vm1, %v333_v24  ;;  %2005 = vmatmul.mubr.msk.f32.gmra.mxu1 %vm345_vm1, %v658_v25 }
  0x30   : > { %2007 = vmatprep.mubr.msk.f32.mxu1 %vm345_vm1, %v659_v26 }
  0x32   : > { %1982 = vmatmul.mubr.msk.f32.gmra.mxu0 %vm345_vm1, %v334_v27 }
  0x33   : > { %1984 = vmatprep.mubr.msk.f32.mxu0 %vm345_vm1, %v335_v28  ;;  %2008 = vmatmul.mubr.msk.f32.gmra.mxu1 %vm345_vm1, %v660_v29  ;;  %v2348_v29 = vld [vmem:[%s3237_s3 + $0x8] ss:$0 sm:$0xff] }
  0x36   : > { %1985 = vmatmul.mubr.msk.f32.gmra.mxu0 %vm345_vm1, %v336_v30 }
  0xda   : > { %v1965_v31 = vpop.f32.mrf.mxu0 }
  0xdb   : > { %v608_v32 = vmax.f32 %v1965_v31, 0.0  ;;  %v1989_v34 = vpop.f32.mrf.mxu1 }
  0xdc   : > { %v488_v35 = vpop.f32.mrf.mxu0  ;;  %v624_v36 = vmax.f32 %v1989_v34, 0.0 }
  0xdd   : > { %v607_v37 = vmax.f32 %v488_v35, 0.0  ;;  %v568_v38 = vpop.f32.mrf.mxu1  ;;  %v2245_v39 = vmul.f32 %v2242_v33, %v608_v32  ;;  %v2263_v51 = vmul.f32 %v2252_v42, %v608_v32  ;;  %v2273_v54 = vmul.f32 %v2259_v49, %v608_v32 }
  0xde   : > { %v1968_v40 = vpop.f32.mrf.mxu0  ;;  %648 = vst [vmem:[#allocation2 + $0x78] sm:$0xff] %v624_v36  ;;  %v2247_v41 = vmax.f32 %v568_v38, 0.0 }
  0xdf   : > { %v860_v43 = vmul.f32 %v2242_v33, %v607_v37  ;;  %v610_v44 = vmax.f32 %v1968_v40, 0.0  ;;  %v985_v47 = vmul.f32 %v2252_v42, %v607_v37  ;;  %v910_v50 = vrot.slane %v2245_v39, 1  ;;  %v1992_v17 = vpop.f32.mrf.mxu1 }
  0xe0   : > { %v498_v45 = vpop.f32.mrf.mxu0  ;;  %v2270_v53 = vmul.f32 %v2242_v33, %v2247_v41  ;;  %v824_v55 = vmul.f32 %v2259_v49, %v607_v37  ;;  %v1035_v60 = vrot.slane %v2263_v51, 2  ;;  %v835_v1 = vmul.f32 %v2259_v49, %v2247_v41 }
  0xe1   : > { %v909_v46 = vrot.slane %v860_v43, 1  ;;  %v609_v48 = vmax.f32 %v498_v45, 0.0  ;;  %v1034_v56 = vrot.slane %v985_v47, 2  ;;  %v2282_v58 = vmul.f32 %v2242_v33, %v610_v44  ;;  %v578_v40 = vpop.f32.mrf.mxu1 }
  0xe2   : > { %3258 = vst [vmem:[#allocation3_spill] sm:$0xff] %v2270_v53  ;;  %v2296_v63 = vmul.f32 %v2252_v42, %v610_v44  ;;  %v2302_v3 = vmul.f32 %v2259_v49, %v610_v44  ;;  %v2306_v5 = vmul.f32 %v2252_v42, %v2247_v41  ;;  %v2310_v6 = vmul.f32 %v2279_v57, %v2247_v41  ;;  %v1971_v7 = vpop.f32.mrf.mxu0 }
  0xe3   : > { %633 = vst [vmem:[#allocation2 + $0xd8] sm:$0xff] %v609_v48  ;;  %v911_v52 = vsel %vm908_vm2, %v909_v46, %v910_v50  ;;  %v1135_v8 = vmul.f32 %v2279_v57, %v610_v44  ;;  %v3242_v12 = vrot.slane %v2270_v53, 1  ;;  %v914_v13 = vrot.slane %v2282_v58, 1 }
  0xe4   : > { %v965_v2 = vadd.f32 %v911_v52, %v824_v55  ;;  %3259 = vst [vmem:[#allocation4_spill] sm:$0xff] %v2306_v5  ;;  %3260 = vst [vmem:[#allocation5_spill] sm:$0xff] %v2310_v6  ;;  %v1036_v14 = vsel %vm1033_vm3, %v1034_v56, %v1035_v60  ;;  %v2320_v15 = vmul.f32 %v2288_v61, %v610_v44  ;;  %v508_v28 = vpop.f32.mrf.mxu0  ;;  %v3241_v32 = vrot.slane %v2306_v5, 2 }
  0xe5   : > { %v813_v59 = vld [vmem:[#allocation2 + $0x78] sm:$0x3]  ;;  %v2323_v16 = vmul.f32 %v2293_v62, %v610_v44  ;;  %v2334_v22 = vmul.f32 %v2288_v61, %v2247_v41  ;;  %v2338_v23 = vmul.f32 %v2293_v62, %v2247_v41  ;;  %v612_v34 = vmax.f32 %v1971_v7, 0.0 }
  0xe6   : > { %v877_v0 = vmul.f32 %v2242_v33, %v813_v59  ;;  %v1121_v4 = vld [vmem:[#allocation2 + $0x78] sm:$0x3]  ;;  %v1002_v10 = vmul.f32 %v2252_v42, %v813_v59  ;;  %v1090_v24 = vadd.f32 %v1036_v14, %v965_v2  ;;  %v626_v38 = vmax.f32 %v1992_v17, 0.0 }
  0xe7   : > { %v1427_v11 = vld [vmem:[#allocation2 + $0x78] sm:$0x3]  ;;  %v1185_v20 = vmul.f32 %v2288_v61, %v1121_v4  ;;  %3261 = vst [vmem:[#allocation6_spill] sm:$0xff] %v2334_v22  ;;  %3262 = vst [vmem:[#allocation7_spill] sm:$0xff] %v2338_v23  ;;  %v1309_v25 = vmul.f32 %v2293_v62, %v1121_v4  ;;  %v3240_v44 = vrot.slane %v2334_v22, 1  ;;  %v2359_v45 = vmax.f32 %v508_v28, 0.0 }
  0xe8   : > { %v937_v9 = vrot.slane %v877_v0, 1  ;;  %v2342_v26 = vmul.f32 %v2329_v19, %v1427_v11  ;;  %v1062_v30 = vrot.slane %v1002_v10, 2  ;;  %v2355_v35 = vmul.f32 %v2348_v29, %v1427_v11  ;;  %636 = vst [vmem:[#allocation2 + $0x68] sm:$0xff] %v612_v34  ;;  %650 = vst [vmem:[#allocation2 + $0x10] sm:$0xff] %v626_v38 }
  0xe9   : > { %v1242_v43 = vrot.slane %v1185_v20, 1  ;;  %v2361_v46 = vmax.f32 %v578_v40, 0.0  ;;  %v1366_v48 = vrot.slane %v1309_v25, 2  ;;  %v3239_v55 = vrot.slane %v2338_v23, 2 }
  0xea   : > { %v798_v21 = vld [vmem:[#allocation2 + $0xd8] sm:$0x3]  ;;  %3263 = vst [vmem:[#allocation8_spill] sm:$0xff] %v2342_v26  ;;  %v938_v31 = vsel %vm908_vm2, %v3242_v12, %v937_v9  ;;  %3264 = vst [vmem:[#allocation9_spill] sm:$0xff] %v2355_v35  ;;  %v2370_v59 = vmul.f32 %v2329_v19, %v2247_v41  ;;  %v2374_v0 = vmul.f32 %v2348_v29, %v2247_v41 }
  0xeb   : > { %v862_v27 = vmul.f32 %v2242_v33, %v798_v21  ;;  %v987_v37 = vmul.f32 %v2252_v42, %v798_v21  ;;  %v976_v52 = vadd.f32 %v938_v31, %v835_v1  ;;  %v1063_v2 = vsel %vm1033_vm3, %v3241_v32, %v1062_v30 }
  0xec   : > { %3265 = vst [vmem:[#allocation10_spill] sm:$0xff] %v2370_v59  ;;  %3266 = vst [vmem:[#allocation11_spill] sm:$0xff] %v2374_v0  ;;  %v2379_v1 = vadd.f32 %v1135_v8, %v1090_v24  ;;  %v2392_v10 = vsel %vm908_vm2, %v3240_v44, %v1242_v43  ;;  %v2399_v11 = vmul.f32 %v2242_v33, %v626_v38 }
  0xed   : > { %v912_v36 = vrot.slane %v862_v27, 1  ;;  %v1037_v7 = vrot.slane %v987_v37, 2  ;;  %3267 = vst [vmem:[#allocation12_spill] sm:$0xff] %v2392_v10  ;;  %v2403_v17 = vmul.f32 %v2252_v42, %v626_v38  ;;  %v1101_v20 = vadd.f32 %v1063_v2, %v976_v52 }
  0xee   : > { %v1146_v21 = vmul.f32 %v2279_v57, %v626_v38  ;;  %v2409_v24 = vsel %vm1033_vm3, %v3239_v55, %v1366_v48  ;;  %v2414_v27 = vmul.f32 %v2288_v61, %v626_v38  ;;  %v2420_v31 = vmul.f32 %v2259_v49, %v626_v38  ;;  %v1974_v55 = vpop.f32.mrf.mxu0 }
  0xef   : > { %v913_v56 = vsel %vm908_vm2, %v910_v50, %v912_v36  ;;  %v2386_v50 = vld [vmem:[%s3237_s3 + $0x6] ss:$0 sm:$0xff]  ;;  %3269 = vst [vmem:[#allocation14_spill] sm:$0xff] %v2409_v24  ;;  %v801_v28 = vld [vmem:[#allocation2 + $0x68] sm:$0x3]  ;;  %v2423_v34 = vmul.f32 %v2293_v62, %v626_v38  ;;  %v2426_v36 = vmul.f32 %v2329_v19, %v626_v38  ;;  %v3243_v40 = vrot.slane %v2399_v11, 1 }
  0xf0   : > { %v2396_v8 = vmul.f32 %v2386_v50, %v2247_v41  ;;  %v966_v14 = vadd.f32 %v913_v56, %v2273_v54  ;;  %v1038_v54 = vsel %vm1033_vm3, %v1035_v60, %v1037_v7  ;;  %v1109_v30 = vld [vmem:[#allocation2 + $0x68] sm:$0x3]  ;;  %v865_v37 = vmul.f32 %v2242_v33, %v801_v28 }
  0xf1   : > { %3270 = vst [vmem:[#allocation15_spill] sm:$0xff] %v2426_v36  ;;  %v2431_v43 = vmul.f32 %v2348_v29, %v626_v38  ;;  %v864_v51 = vmul.f32 %v2242_v33, %v2359_v45  ;;  %v2436_v48 = vadd.f32 %v1146_v21, %v1101_v20  ;;  %v2440_v52 = vmul.f32 %v2252_v42, %v2359_v45 }
  0xf2   : > { %3268 = vst [vmem:[#allocation13_spill] sm:$0xff] %v2396_v8  ;;  %v1091_v56 = vadd.f32 %v1038_v54, %v966_v14  ;;  %v917_v2 = vrot.slane %v865_v37, 1  ;;  %v1173_v7 = vmul.f32 %v2288_v61, %v1109_v30  ;;  %v1172_v38 = vmul.f32 %v2288_v61, %v2359_v45 }
  0xf3   : > { %3271 = vst [vmem:[#allocation16_spill] sm:$0xff] %v2431_v43  ;;  %v827_v20 = vmul.f32 %v2259_v49, %v2359_v45  ;;  %v1136_v21 = vmul.f32 %v2279_v57, %v2359_v45  ;;  %v990_v14 = vmul.f32 %v2252_v42, %v801_v28  ;;  %v915_v37 = vrot.slane %v864_v51, 1 }
  0xf4   : > { %v878_v25 = vmul.f32 %v2242_v33, %v2361_v46  ;;  %v1297_v44 = vmul.f32 %v2293_v62, %v1109_v30  ;;  %v836_v4 = vmul.f32 %v2259_v49, %v2361_v46  ;;  %v1222_v18 = vrot.slane %v1173_v7, 1 }
  0xf5   : > { %v1152_v12 = vadd.f32 %v1136_v21, %v1091_v56  ;;  %v918_v39 = vsel %vm908_vm2, %v915_v37, %v917_v2  ;;  %v1220_v9 = vrot.slane %v1172_v38, 1  ;;  %v1003_v51 = vmul.f32 %v2252_v42, %v2361_v46 }
  0xf6   : > { %v939_v28 = vrot.slane %v878_v25, 1  ;;  %v1492_v60 = vmul.f32 %v2329_v19, %v2361_v46  ;;  %v1616_v30 = vmul.f32 %v2348_v29, %v2361_v46  ;;  %v614_v54 = vmax.f32 %v1974_v55, 0.0 }
  0xf7   : > { %v1042_v32 = vrot.slane %v990_v14, 2  ;;  %v2469_v56 = vmul.f32 %v2293_v62, %v2359_v45  ;;  %v1186_v25 = vmul.f32 %v2288_v61, %v2361_v46  ;;  %v1310_v38 = vmul.f32 %v2293_v62, %v2361_v46 }
  0xf8   : > { %v941_v2 = vsel %vm908_vm2, %v939_v28, %v3243_v40  ;;  %v1548_v21 = vrot.slane %v1492_v60, 1  ;;  %v1672_v41 = vrot.slane %v1616_v30, 2  ;;  %v1346_v47 = vrot.slane %v1297_v44, 2 }
  0xf9   : > { %v977_v7 = vadd.f32 %v941_v2, %v836_v4  ;;  %v916_v55 = vsel %vm908_vm2, %v914_v13, %v915_v37  ;;  %v968_v45 = vadd.f32 %v918_v39, %v827_v20  ;;  %v3272_v14 = vrot.slane %v2320_v15, 1  ;;  %v518_v39 = vpop.f32.mrf.mxu0 }
  0xfa   : > { %v1223_v28 = vsel %vm908_vm2, %v1220_v9, %v1222_v18  ;;  %v1064_v40 = vrot.slane %v1003_v51, 2  ;;  %v3273_v4 = vrot.slane %v2426_v36, 1  ;;  %v3275_v60 = vrot.slane %v2431_v43, 2 }
  0xfb   : > { %v1221_v24 = vsel %vm908_vm2, %v3272_v14, %v1220_v9  ;;  %v1276_v13 = vadd.f32 %v1223_v28, %v1152_v12  ;;  %v1344_v44 = vrot.slane %v2469_v56, 2  ;;  %v2498_v15 = vmul.f32 %v2279_v57, %v2361_v46 }
  0xfc   : > { %v2488_v2 = vsel %vm908_vm2, %v1548_v21, %v3273_v4  ;;  %v2493_v58 = vsel %vm1033_vm3, %v1672_v41, %v3275_v60  ;;  %v1244_v18 = vrot.slane %v1186_v25, 1  ;;  %v1368_v9 = vrot.slane %v1310_v38, 2  ;;  %v1995_v38 = vpop.f32.mrf.mxu1 }
  0xfd   : > { %3274 = vst [vmem:[#allocation17_spill] sm:$0xff] %v2488_v2  ;;  %3276 = vst [vmem:[#allocation18_spill] sm:$0xff] %v2493_v58  ;;  %v2501_v20 = vmul.f32 %v2242_v33, %v614_v54  ;;  %v2504_v37 = vmul.f32 %v2252_v42, %v614_v54  ;;  %v3278_v51 = vrot.slane %v2440_v52, 2  ;;  %v2510_v30 = vmul.f32 %v2288_v61, %v614_v54 }
  0xfe   : > { %3277 = vst [vmem:[#allocation19_spill] sm:$0xff] %v2498_v15  ;;  %v2513_v56 = vmul.f32 %v2293_v62, %v614_v54  ;;  %v1347_v25 = vsel %vm1033_vm3, %v1344_v44, %v1346_v47  ;;  %v2518_v21 = vmul.f32 %v2329_v19, %v614_v54  ;;  %v2520_v14 = vmax.f32 %v1995_v38, 0.0 }
  0xff   : > { %v1043_v41 = vsel %vm1033_vm3, %v3278_v51, %v1042_v32  ;;  %v3279_v32 = vrot.slane %v2403_v17, 2  ;;  %v613_v28 = vmax.f32 %v518_v39, 0.0  ;;  %v2527_v4 = vmul.f32 %v2386_v50, %v2361_v46 }
 0x100   : > { %v1093_v12 = vadd.f32 %v1043_v41, %v968_v45  ;;  %v1400_v60 = vadd.f32 %v1347_v25, %v1276_v13  ;;  %v2530_v47 = vmul.f32 %v2348_v29, %v614_v54  ;;  %v3281_v41 = vrot.slane %v2414_v27, 1 }
 0x101   : > { %v1066_v45 = vsel %vm1033_vm3, %v1064_v40, %v3279_v32  ;;  %3280 = vst [vmem:[#allocation20_spill] sm:$0xff] %v2527_v4  ;;  %v3283_v43 = vrot.slane %v2423_v34, 2  ;;  %v2545_v39 = vmul.f32 %v2259_v49, %v614_v54  ;;  %v1138_v46 = vmul.f32 %v2279_v57, %v614_v54 }
 0x102   : > { %v2532_v51 = vadd.f32 %v1066_v45, %v977_v7  ;;  %v2537_v38 = vsel %vm908_vm2, %v1244_v18, %v3281_v41  ;;  %v1445_v25 = vmul.f32 %v2386_v50, %v614_v54  ;;  %v967_v18 = vadd.f32 %v916_v55, %v2302_v3  ;;  %v588_v7 = vpop.f32.mrf.mxu1 }
 0x103   : > { %3282 = vst [vmem:[#allocation21_spill] sm:$0xff] %v2537_v38  ;;  %v2542_v40 = vsel %vm1033_vm3, %v1368_v9, %v3283_v43  ;;  %v2557_v32 = vadd.f32 %v1138_v46, %v1093_v12  ;;  %v2567_v54 = vmul.f32 %v2259_v49, %v2520_v14  ;;  %v2571_v3 = vmul.f32 %v2242_v33, %v2520_v14  ;;  %v1977_v43 = vpop.f32.mrf.mxu0 }
 0x104   : > { %3284 = vst [vmem:[#allocation22_spill] sm:$0xff] %v2542_v40  ;;  %v2562_v41 = vadd.f32 %v1445_v25, %v1400_v60  ;;  %v2575_v55 = vmul.f32 %v2252_v42, %v2520_v14  ;;  %v866_v12 = vmul.f32 %v2242_v33, %v613_v28  ;;  %v991_v46 = vmul.f32 %v2252_v42, %v613_v28 }
 0x105   : > { %v3285_v60 = vrot.slane %v2440_v52, 2  ;;  %v3286_v25 = vrot.slane %v2296_v63, 2  ;;  %v1147_v45 = vmul.f32 %v2279_v57, %v2520_v14  ;;  %v1174_v36 = vmul.f32 %v2288_v61, %v613_v28 }
 0x106   : > { %v1275_v35 = vadd.f32 %v1221_v24, %v2379_v1  ;;  %v2592_v10 = vmul.f32 %v2288_v61, %v2520_v14  ;;  %v828_v63 = vmul.f32 %v2259_v49, %v613_v28  ;;  %v919_v52 = vrot.slane %v866_v12, 1 }
 0x107   : > { %v1041_v9 = vsel %vm1033_vm3, %v3286_v25, %v3285_v60  ;;  %v3287_v60 = vrot.slane %v2323_v16, 2  ;;  %v1044_v8 = vrot.slane %v991_v46, 2  ;;  %v1137_v26 = vmul.f32 %v2279_v57, %v613_v28  ;;  %v528_v46 = vpop.f32.mrf.mxu0 }
 0x108   : > { %v1092_v13 = vadd.f32 %v1041_v9, %v967_v18  ;;  %v1444_v9 = vmul.f32 %v2386_v50, %v613_v28  ;;  %v3288_v1 = vrot.slane %v2501_v20, 1  ;;  %v1298_v12 = vmul.f32 %v2293_v62, %v613_v28 }
 0x109   : > { %v1345_v25 = vsel %vm1033_vm3, %v3287_v60, %v1344_v44  ;;  %v1480_v16 = vmul.f32 %v2329_v19, %v613_v28  ;;  %v1604_v44 = vmul.f32 %v2348_v29, %v613_v28  ;;  %v1998_v60 = vpop.f32.mrf.mxu1  ;;  %v1224_v58 = vrot.slane %v1174_v36, 1 }
 0x10a   : > { %v1399_v18 = vadd.f32 %v1345_v25, %v1275_v35  ;;  %v921_v24 = vsel %vm908_vm2, %v919_v52, %v3288_v1  ;;  %v627_v25 = vmax.f32 %v588_v7, 0.0  ;;  %v1153_v2 = vadd.f32 %v1137_v26, %v1092_v13 }
 0x10b   : > { %v969_v6 = vadd.f32 %v921_v24, %v828_v63  ;;  %v1528_v40 = vrot.slane %v1480_v16, 1  ;;  %v1652_v0 = vrot.slane %v1604_v44, 2  ;;  %v616_v4 = vmax.f32 %v1977_v43, 0.0  ;;  %v598_v63 = vpop.f32.mrf.mxu1 }
 0x10c   : > { %v1460_v35 = vadd.f32 %v1444_v9, %v1399_v18  ;;  %v2610_v38 = vmul.f32 %v2293_v62, %v2520_v14  ;;  %651 = vst [vmem:[#allocation2 + $0x38] sm:$0xff] %v627_v25  ;;  %v3289_v52 = vrot.slane %v2504_v37, 2  ;;  %v630_v1 = vmax.f32 %v1998_v60, 0.0 }
 0x10d   : > { %v615_v59 = vmax.f32 %v528_v46, 0.0  ;;  %v2618_v36 = vmul.f32 %v2329_v19, %v2520_v14  ;;  %v2622_v26 = vmul.f32 %v2348_v29, %v2520_v14  ;;  %v1348_v13 = vrot.slane %v1298_v12, 2 }
 0x10e   : > { %v1046_v28 = vsel %vm1033_vm3, %v1044_v8, %v3289_v52  ;;  %v3290_v7 = vrot.slane %v2518_v21, 1  ;;  %v2629_v18 = vmul.f32 %v2386_v50, %v2520_v14  ;;  %v3292_v8 = vrot.slane %v2510_v30, 1  ;;  %654 = vst [vmem:[#allocation2 + $0xa0] sm:$0xff] %v630_v1  ;;  %v2003_v1 = vpop.f32.mrf.mxu1 }
 0x10f   : > { %v1094_v16 = vadd.f32 %v1046_v28, %v969_v6  ;;  %639 = vst [vmem:[#allocation2 + $0x80] sm:$0xff] %v615_v59  ;;  %v2645_v6 = vadd.f32 %v1147_v45, %v2532_v51  ;;  %v2652_v28 = vmul.f32 %v2242_v33, %v616_v4  ;;  %v2660_v51 = vmul.f32 %v2252_v42, %v616_v4 }
 0x110   : > { %v1530_v43 = vsel %vm908_vm2, %v1528_v40, %v3290_v7  ;;  %3291 = vst [vmem:[#allocation23_spill] sm:$0xff] %v2629_v18  ;;  %v1226_v9 = vsel %vm908_vm2, %v1224_v58, %v3292_v8  ;;  %v3293_v40 = vrot.slane %v2530_v47, 2  ;;  %v1980_v58 = vpop.f32.mrf.mxu0  ;;  %v2662_v45 = vmax.f32 %v598_v63, 0.0 }
 0x111   : > { %v1584_v24 = vadd.f32 %v1530_v43, %v1460_v35  ;;  %v1277_v14 = vadd.f32 %v1226_v9, %v1153_v2  ;;  %v3294_v2 = vrot.slane %v2513_v56, 2  ;;  %v618_v7 = vmax.f32 %v1980_v58, 0.0 }
 0x112   : > { %v1654_v60 = vsel %vm1033_vm3, %v1652_v0, %v3293_v40  ;;  %v2664_v43 = vmax.f32 %v2003_v1, 0.0  ;;  %v2670_v40 = vmul.f32 %v2293_v62, %v616_v4  ;;  %v2682_v46 = vmul.f32 %v2259_v49, %v616_v4 }
 0x113   : > { %v1708_v35 = vadd.f32 %v1654_v60, %v1584_v24  ;;  %v1350_v0 = vsel %vm1033_vm3, %v1348_v13, %v3294_v2  ;;  %v816_v8 = vld [vmem:[#allocation2 + $0x38] sm:$0x3]  ;;  %v2667_v24 = vmul.f32 %v2288_v61, %v616_v4  ;;  %v2673_v60 = vmul.f32 %v2329_v19, %v616_v4  ;;  %642 = vst [vmem:[#allocation2 + $0xb8] sm:$0xff] %v618_v7 }
 0x114   : > { %v1124_v9 = vld [vmem:[#allocation2 + $0x38] sm:$0x3]  ;;  %3295 = vst [vmem:[#allocation24_spill] sm:$0xff] %v2670_v40  ;;  %v1401_v13 = vadd.f32 %v1350_v0, %v1277_v14  ;;  %v1005_v63 = vmul.f32 %v2252_v42, %v816_v8  ;;  %v1139_v12 = vmul.f32 %v2279_v57, %v616_v4  ;;  %v1446_v14 = vmul.f32 %v2386_v50, %v616_v4 }
 0x115   : > { %1725 = vst.msk [vmem:[%s2639_s23] sm:$0xff] %vm1724_vm4, %v1708_v35  ;;  %v880_v35 = vmul.f32 %v2242_v33, %v816_v8  ;;  %v1188_v58 = vmul.f32 %v2288_v61, %v1124_v9  ;;  %v1312_v2 = vmul.f32 %v2293_v62, %v1124_v9  ;;  %v2679_v1 = vld [vmem:[#allocation2 + $0x38] sm:$0x3]  ;;  %v2687_v0 = vmul.f32 %v2348_v29, %v616_v4  ;;  %v819_v44 = vld [vmem:[#allocation2 + $0xa0] sm:$0x3] }
 0x116   : > { %3296 = vst [vmem:[#allocation25_spill] sm:$0xff] %v2679_v1  ;;  %v1067_v25 = vrot.slane %v1005_v63, 2  ;;  %v2691_v18 = vadd.f32 %v1139_v12, %v1094_v16  ;;  %v1127_v23 = vld [vmem:[#allocation2 + $0xa0] sm:$0x3]  ;;  %v2696_v22 = vmul.f32 %v2329_v19, %v2679_v1  ;;  %v3299_v9 = vrot.slane %v2399_v11, 1 }
 0x117   : > { %v942_v52 = vrot.slane %v880_v35, 1  ;;  %v1247_v8 = vrot.slane %v1188_v58, 1  ;;  %v1371_v59 = vrot.slane %v1312_v2, 2  ;;  %v2699_v35 = vadd.f32 %v1446_v14, %v1401_v13  ;;  %v1433_v58 = vld [vmem:[#allocation2 + $0xa0] sm:$0x3] }
 0x118   : > { %3297 = vst [vmem:[#allocation26_spill] sm:$0xff] %v2691_v18  ;;  %3298 = vst [vmem:[#allocation27_spill] sm:$0xff] %v2696_v22  ;;  %v804_v2 = vld [vmem:[#allocation2 + $0x80] sm:$0x3]  ;;  %v883_v7 = vmul.f32 %v2242_v33, %v819_v44  ;;  %v2708_v15 = vmul.f32 %v2252_v42, %v819_v44  ;;  %v3300_v4 = vrot.slane %v2403_v17, 2  ;;  %v3301_v14 = vrot.slane %v2414_v27, 1 }
 0x119   : > { %v943_v16 = vsel %vm908_vm2, %v3299_v9, %v942_v52  ;;  %v1112_v1 = vld [vmem:[#allocation2 + $0x80] sm:$0x3]  ;;  %v3302_v11 = vrot.slane %v2423_v34, 2  ;;  %v1191_v9 = vmul.f32 %v2288_v61, %v1127_v23  ;;  %v2721_v12 = vmul.f32 %v2293_v62, %v1127_v23 }
 0x11a   : > { %v1068_v13 = vsel %vm1033_vm3, %v3300_v4, %v1067_v25  ;;  %v1248_v63 = vsel %vm908_vm2, %v3301_v14, %v1247_v8  ;;  %v2724_v44 = vmul.f32 %v2329_v19, %v1433_v58  ;;  %v868_v17 = vmul.f32 %v2242_v33, %v804_v2  ;;  %v1418_v4 = vld [vmem:[#allocation2 + $0x80] sm:$0x3] }
 0x11b   : > { %v1372_v52 = vsel %vm1033_vm3, %v3302_v11, %v1371_v59  ;;  %v993_v25 = vmul.f32 %v2252_v42, %v804_v2  ;;  %v978_v27 = vadd.f32 %v943_v16, %v2420_v31  ;;  %v2730_v8 = vmul.f32 %v2348_v29, %v1433_v58 }
 0x11c   : > { %v1176_v34 = vmul.f32 %v2288_v61, %v1112_v1  ;;  %v1300_v59 = vmul.f32 %v2293_v62, %v1112_v1  ;;  %v1286_v23 = vadd.f32 %v1248_v63, %v2436_v48  ;;  %v947_v14 = vrot.slane %v883_v7, 1 }
 0x11d   : > { %v922_v11 = vrot.slane %v868_v17, 1  ;;  %v1047_v22 = vrot.slane %v993_v25, 2  ;;  %v1252_v53 = vrot.slane %v1191_v9, 1  ;;  %v1482_v2 = vmul.f32 %v2329_v19, %v1418_v4 }
 0x11e   : > { %v1606_v40 = vmul.f32 %v2348_v29, %v1418_v4  ;;  %v1556_v58 = vrot.slane %v2724_v44, 1  ;;  %v1227_v16 = vrot.slane %v1176_v34, 1  ;;  %v882_v1 = vmul.f32 %v2242_v33, %v2662_v45 }
 0x11f   : > { %v1680_v48 = vrot.slane %v2730_v8, 2  ;;  %v3303_v7 = vrot.slane %v2501_v20, 1  ;;  %v1351_v17 = vrot.slane %v1300_v59, 2  ;;  %v1531_v9 = vrot.slane %v1482_v2, 1 }
 0x120   : > { %v3304_v25 = vrot.slane %v2504_v37, 2  ;;  %v1655_v31 = vrot.slane %v1606_v40, 2  ;;  %v839_v44 = vmul.f32 %v2259_v49, %v2662_v45  ;;  %v945_v34 = vrot.slane %v882_v1, 1 }
 0x121   : > { %v923_v63 = vsel %vm908_vm2, %v3303_v7, %v922_v11  ;;  %v3305_v5 = vrot.slane %v2518_v21, 1  ;;  %v1103_v18 = vadd.f32 %v1068_v13, %v978_v27  ;;  %v1148_v20 = vmul.f32 %v2279_v57, %v2662_v45 }
 0x122   : > { %v2749_v4 = vsel %vm1033_vm3, %v3304_v25, %v1047_v22  ;;  %v1190_v59 = vmul.f32 %v2288_v61, %v2662_v45  ;;  %v2761_v37 = vadd.f32 %v923_v63, %v2545_v39  ;;  %v3306_v22 = vrot.slane %v2510_v30, 1 }
 0x123   : > { %v1532_v8 = vsel %vm908_vm2, %v3305_v5, %v1531_v9  ;;  %v3307_v21 = vrot.slane %v2571_v3, 1  ;;  %v3308_v13 = vrot.slane %v2530_v47, 2  ;;  %v948_v2 = vsel %vm908_vm2, %v945_v34, %v947_v14  ;;  %v1115_v9 = vld [vmem:[#allocation2 + $0xb8] sm:$0x3] }
 0x124   : > { %v1228_v40 = vsel %vm908_vm2, %v3306_v22, %v1227_v16  ;;  %v1585_v11 = vadd.f32 %v1532_v8, %v2562_v41  ;;  %v2778_v39 = vmul.f32 %v2252_v42, %v2662_v45  ;;  %v1250_v30 = vrot.slane %v1190_v59, 1  ;;  %v807_v16 = vld [vmem:[#allocation2 + $0xb8] sm:$0x3] }
 0x125   : > { %v2770_v5 = vsel %vm908_vm2, %v3307_v21, %v945_v34  ;;  %v1656_v27 = vsel %vm1033_vm3, %v3308_v13, %v1655_v31  ;;  %v1164_v41 = vadd.f32 %v1148_v20, %v1103_v18  ;;  %v1410_v7 = vadd.f32 %v1372_v52, %v1286_v23  ;;  %v1421_v22 = vld [vmem:[#allocation2 + $0xb8] sm:$0x3] }
 0x126   : > { %v1709_v1 = vadd.f32 %v1656_v27, %v1585_v11  ;;  %v1455_v3 = vmul.f32 %v2386_v50, %v2662_v45  ;;  %v1253_v63 = vsel %vm908_vm2, %v1250_v30, %v1252_v53  ;;  %v2785_v47 = vmul.f32 %v2293_v62, %v2662_v45 }
 0x127   : > { %v1496_v14 = vmul.f32 %v2329_v19, %v2662_v45  ;;  %v1620_v31 = vmul.f32 %v2348_v29, %v2662_v45  ;;  %v1278_v25 = vadd.f32 %v1228_v40, %v2557_v32  ;;  %v3309_v18 = vrot.slane %v2513_v56, 2 }
 0x128   : > { %1726 = vst.msk [vmem:[%s2639_s23 + $0x8] sm:$0xff] %vm1724_vm4, %v1709_v1  ;;  %v1471_v53 = vadd.f32 %v1455_v3, %v1410_v7  ;;  %v2798_v23 = vmul.f32 %v2242_v33, %v807_v16  ;;  %v980_v34 = vadd.f32 %v948_v2, %v839_v44  ;;  %v1070_v8 = vrot.slane %v2778_v39, 2 }
 0x129   : > { %v1352_v52 = vsel %vm1033_vm3, %v3309_v18, %v1351_v17  ;;  %v1554_v20 = vrot.slane %v1496_v14, 1  ;;  %v1678_v59 = vrot.slane %v1620_v31, 2  ;;  %v3310_v45 = vrot.slane %v2592_v10, 1 }
 0x12a   : > { %v1288_v56 = vadd.f32 %v1253_v63, %v1164_v41  ;;  %v2807_v17 = vmul.f32 %v2252_v42, %v807_v16  ;;  %v2810_v40 = vmul.f32 %v2288_v61, %v1115_v9  ;;  %v1374_v11 = vrot.slane %v2785_v47, 2 }
 0x12b   : > { %v2804_v32 = vsel %vm908_vm2, %v3310_v45, %v1250_v30  ;;  %v1557_v44 = vsel %vm908_vm2, %v1554_v20, %v1556_v58  ;;  %v1681_v21 = vsel %vm1033_vm3, %v1678_v59, %v1680_v48  ;;  %v927_v13 = vrot.slane %v2798_v23, 1 }
 0x12c   : > { %v1595_v27 = vadd.f32 %v1557_v44, %v1471_v53  ;;  %v2817_v10 = vmul.f32 %v2293_v62, %v1115_v9  ;;  %v1485_v2 = vmul.f32 %v2329_v19, %v1421_v22  ;;  %v1609_v30 = vmul.f32 %v2348_v29, %v1421_v22  ;;  %v538_v9 = vpop.f32.mrf.mxu0 }
 0x12d   : > { %v3311_v16 = vrot.slane %v2618_v36, 1  ;;  %v3312_v58 = vrot.slane %v2622_v26, 2  ;;  %v3313_v41 = vrot.slane %v2708_v15, 2  ;;  %v1150_v3 = vmul.f32 %v2279_v57, %v2664_v43 }
 0x12e   : > { %v1719_v63 = vadd.f32 %v1681_v21, %v1595_v27  ;;  %v1232_v14 = vrot.slane %v2810_v40, 1  ;;  %v2842_v26 = vmul.f32 %v2288_v61, %v2664_v43  ;;  %v2846_v15 = vmul.f32 %v2293_v62, %v2664_v43  ;;  %v745_v27 = vpop.f32.mrf.mxu1 }
 0x12f   : > { %v2824_v1 = vsel %vm908_vm2, %v3311_v16, %v1554_v20  ;;  %v2829_v48 = vsel %vm1033_vm3, %v3312_v58, %v1678_v59  ;;  %v1073_v7 = vsel %vm1033_vm3, %v1070_v8, %v3313_v41  ;;  %v3314_v18 = vrot.slane %v2721_v12, 2 }
 0x130   : > { %v1105_v31 = vadd.f32 %v1073_v7, %v980_v34  ;;  %v1457_v23 = vmul.f32 %v2386_v50, %v2664_v43  ;;  %1736 = vst.msk [vmem:[%s2639_s23 + $0x58] sm:$0xff] %vm1724_vm4, %v1719_v63  ;;  %v1536_v20 = vrot.slane %v1485_v2, 1  ;;  %v1660_v45 = vrot.slane %v1609_v30, 2 }
 0x131   : > { %v1377_v53 = vsel %vm1033_vm3, %v1374_v11, %v3314_v18  ;;  %v2862_v44 = vmul.f32 %v2329_v19, %v2664_v43  ;;  %v2866_v12 = vmul.f32 %v2348_v29, %v2664_v43  ;;  %v617_v21 = vmax.f32 %v538_v9, 0.0 }
 0x132   : > { %v2858_v59 = vadd.f32 %v1150_v3, %v1105_v31  ;;  %v1412_v22 = vadd.f32 %v1377_v53, %v1288_v56  ;;  %v1402_v58 = vadd.f32 %v1352_v52, %v1278_v25  ;;  %v774_v41 = vmax.f32 %v745_v27, 0.0 }
 0x133   : > { %v979_v2 = vadd.f32 %v2770_v5, %v2567_v54  ;;  %v1255_v56 = vrot.slane %v2842_v26, 1  ;;  %v870_v7 = vmul.f32 %v2242_v33, %v617_v21  ;;  %v1095_v3 = vadd.f32 %v2749_v4, %v2761_v37 }
 0x134   : > { %v2868_v16 = vadd.f32 %v1457_v23, %v1412_v22  ;;  %v2878_v43 = vmul.f32 %v2252_v42, %v617_v21  ;;  %v1178_v63 = vmul.f32 %v2288_v61, %v617_v21  ;;  %v1447_v25 = vmul.f32 %v2386_v50, %v617_v21 }
 0x135   : > { %v1484_v52 = vmul.f32 %v2329_v19, %v617_v21  ;;  %v925_v5 = vrot.slane %v870_v7, 1  ;;  %v2885_v31 = vmul.f32 %v2293_v62, %v617_v21  ;;  %v1608_v9 = vmul.f32 %v2348_v29, %v617_v21 }
 0x136   : > { %v1140_v4 = vmul.f32 %v2279_v57, %v617_v21  ;;  %v1463_v37 = vadd.f32 %v1447_v25, %v1402_v58  ;;  %v831_v23 = vmul.f32 %v2259_v49, %v617_v21  ;;  %v3315_v7 = vrot.slane %v2575_v55, 2 }
 0x137   : > { %v1534_v53 = vrot.slane %v1484_v52, 1  ;;  %v928_v22 = vsel %vm908_vm2, %v925_v5, %v927_v13  ;;  %v1658_v27 = vrot.slane %v1608_v9, 2  ;;  %v1050_v34 = vrot.slane %v2878_v43, 2  ;;  %v3327_v43 = vld [vmem:[#allocation26_spill] sm:$0xff] }
 0x138   : > { %v1071_v30 = vsel %vm1033_vm3, %v3315_v7, %v1070_v8  ;;  %v1156_v54 = vadd.f32 %v1140_v4, %v1095_v3  ;;  %v1230_v36 = vrot.slane %v1178_v63, 1  ;;  %v3316_v18 = vrot.slane %v2673_v60, 1 }
 0x139   : > { %v972_v25 = vadd.f32 %v928_v22, %v831_v23  ;;  %v1354_v21 = vrot.slane %v2885_v31, 2  ;;  %v1537_v13 = vsel %vm908_vm2, %v1534_v53, %v1536_v20  ;;  %v3317_v55 = vrot.slane %v2687_v0, 2  ;;  %v1983_v20 = vpop.f32.mrf.mxu0 }
 0x13a   : > { %v1535_v58 = vsel %vm908_vm2, %v3316_v18, %v1534_v53  ;;  %v1587_v52 = vadd.f32 %v1537_v13, %v1463_v37  ;;  %v1104_v9 = vadd.f32 %v1071_v30, %v979_v2  ;;  %v1149_v3 = vmul.f32 %v2279_v57, %v774_v41 }
 0x13b   : > { %v1586_v39 = vadd.f32 %v1535_v58, %v2699_v35  ;;  %v1659_v8 = vsel %vm1033_vm3, %v3317_v55, %v1658_v27  ;;  %v1661_v60 = vsel %vm1033_vm3, %v1658_v27, %v1660_v45  ;;  %v1192_v18 = vmul.f32 %v2288_v61, %v774_v41 }
 0x13c   : > { %v1287_v4 = vadd.f32 %v2804_v32, %v2645_v6  ;;  %v1711_v53 = vadd.f32 %v1661_v60, %v1587_v52  ;;  %v1165_v35 = vadd.f32 %v1149_v3, %v1104_v9  ;;  %v3318_v0 = vrot.slane %v2610_v38, 2 }
 0x13d   : > { %v1710_v63 = vadd.f32 %v1659_v8, %v1586_v39  ;;  %v1456_v30 = vmul.f32 %v2386_v50, %v774_v41  ;;  %v1254_v45 = vrot.slane %v1192_v18, 1  ;;  %v1316_v37 = vmul.f32 %v2293_v62, %v774_v41  ;;  %v548_v18 = vpop.f32.mrf.mxu0 }
 0x13e   : > { %v1375_v2 = vsel %vm1033_vm3, %v3318_v0, %v1374_v11  ;;  %v1498_v22 = vmul.f32 %v2329_v19, %v774_v41  ;;  %v3319_v6 = vrot.slane %v2652_v28, 1  ;;  %v1233_v38 = vsel %vm908_vm2, %v1230_v36, %v1232_v14  ;;  %1728 = vst.msk [vmem:[%s2639_s23 + $0x18] sm:$0xff] %vm1724_vm4, %v1711_v53 }
 0x13f   : > { %1727 = vst.msk [vmem:[%s2639_s23 + $0x10] sm:$0xff] %vm1724_vm4, %v1710_v63  ;;  %v1411_v23 = vadd.f32 %v1375_v2, %v1287_v4  ;;  %v1622_v47 = vmul.f32 %v2348_v29, %v774_v41  ;;  %v620_v11 = vmax.f32 %v1983_v20, 0.0  ;;  %v1280_v27 = vadd.f32 %v1233_v38, %v1156_v54 }
 0x140   : > { %v926_v32 = vsel %vm908_vm2, %v3319_v6, %v925_v5  ;;  %v1256_v7 = vsel %vm908_vm2, %v1254_v45, %v1255_v56  ;;  %v1558_v13 = vrot.slane %v1498_v22, 1  ;;  %v3320_v28 = vrot.slane %v2667_v24, 1 }
 0x141   : > { %v1472_v58 = vadd.f32 %v1456_v30, %v1411_v23  ;;  %v1289_v39 = vadd.f32 %v1256_v7, %v1165_v35  ;;  %v1682_v40 = vrot.slane %v1622_v47, 2  ;;  %v3321_v14 = vrot.slane %v2807_v17, 2 }
 0x142   : > { %v1231_v5 = vsel %vm908_vm2, %v3320_v28, %v1230_v36  ;;  %v1378_v52 = vrot.slane %v1316_v37, 2  ;;  %v3322_v54 = vrot.slane %v2862_v44, 1  ;;  %v3323_v9 = vrot.slane %v2817_v10, 2  ;;  %v2998_v28 = vld [vmem:[%s3237_s3 + $0x1] ss:$0 sm:$0xff] }
 0x143   : > { %v1053_v41 = vsel %vm1033_vm3, %v1050_v34, %v3321_v14  ;;  %v3324_v3 = vrot.slane %v2866_v12, 2  ;;  %v2954_v60 = vmul.f32 %v2242_v33, %v620_v11  ;;  %v2957_v63 = vmul.f32 %v2252_v42, %v620_v11  ;;  %v2006_v42 = vpop.f32.mrf.mxu1 }
 0x144   : > { %v1560_v55 = vsel %vm908_vm2, %v1558_v13, %v3322_v54  ;;  %v1097_v8 = vadd.f32 %v1053_v41, %v972_v25  ;;  %v1357_v24 = vsel %vm1033_vm3, %v1354_v21, %v3323_v9  ;;  %v2960_v25 = vmul.f32 %v2259_v49, %v620_v11 }
 0x145   : > { %v1596_v36 = vadd.f32 %v1560_v55, %v1472_v58  ;;  %v1684_v17 = vsel %vm1033_vm3, %v1682_v40, %v3324_v3  ;;  %v2963_v10 = vmul.f32 %v2288_v61, %v620_v11  ;;  %v2966_v4 = vmul.f32 %v2293_v62, %v620_v11 }
 0x146   : > { %v1404_v20 = vadd.f32 %v1357_v24, %v1280_v27  ;;  %v1142_v35 = vmul.f32 %v2279_v57, %v620_v11  ;;  %v1449_v33 = vmul.f32 %v2386_v50, %v620_v11  ;;  %v2971_v0 = vmul.f32 %v2329_v19, %v620_v11 }
 0x147   : > { %v1720_v53 = vadd.f32 %v1684_v17, %v1596_v36  ;;  %v2974_v2 = vmul.f32 %v2348_v29, %v620_v11  ;;  %v2976_v30 = vmax.f32 %v2006_v42, 0.0  ;;  %v3325_v45 = vrot.slane %v2846_v15, 2 }
 0x148   : > { %v619_v23 = vmax.f32 %v548_v18, 0.0  ;;  %v930_v22 = vrot.slane %v2954_v60, 1  ;;  %v1055_v6 = vrot.slane %v2957_v63, 2  ;;  %v971_v47 = vadd.f32 %v926_v32, %v2682_v46  ;;  %v3004_v46 = vld [vmem:[%s3237_s3 + $0x2] ss:$0 sm:$0xff] }
 0x149   : > { %v1380_v37 = vsel %vm1033_vm3, %v1378_v52, %v3325_v45  ;;  %1737 = vst.msk [vmem:[%s2639_s23 + $0x60] sm:$0xff] %vm1724_vm4, %v1720_v53  ;;  %v2988_v27 = vadd.f32 %v1142_v35, %v1097_v8  ;;  %v1235_v11 = vrot.slane %v2963_v10, 1  ;;  %v1359_v7 = vrot.slane %v2966_v4, 2  ;;  %v1986_v53 = vpop.f32.mrf.mxu0  ;;  %v3353_v4 = vld [vmem:[#allocation8_spill] sm:$0xff] }
 0x14a   : > { %v2985_v38 = vadd.f32 %v1380_v37, %v1289_v39  ;;  %v2992_v58 = vadd.f32 %v1449_v33, %v1404_v20  ;;  %v1539_v13 = vrot.slane %v2971_v0, 1  ;;  %v872_v39 = vmul.f32 %v2998_v28, %v619_v23 }
 0x14b   : > { %v997_v32 = vmul.f32 %v3004_v46, %v619_v23  ;;  %v3326_v40 = vrot.slane %v2660_v51, 2  ;;  %v1663_v41 = vrot.slane %v2974_v2, 2  ;;  %v3015_v52 = vmul.f32 %v2386_v50, %v2976_v30  ;;  %v3358_v2 = vld [vmem:[#allocation13_spill] sm:$0xff] }
 0x14c   : > { %v832_v54 = vmul.f32 %v2259_v49, %v619_v23  ;;  %v929_v8 = vrot.slane %v872_v39, 1  ;;  %v1141_v24 = vmul.f32 %v2279_v57, %v619_v23  ;;  %v1180_v36 = vmul.f32 %v2288_v61, %v619_v23  ;;  %v755_v49 = vpop.f32.mrf.mxu1 }
 0x14d   : > { %v1051_v14 = vsel %vm1033_vm3, %v3326_v40, %v1050_v34  ;;  %v1054_v9 = vrot.slane %v997_v32, 2  ;;  %v1279_v3 = vadd.f32 %v1231_v5, %v3327_v43  ;;  %v1304_v51 = vmul.f32 %v2293_v62, %v619_v23  ;;  %v3328_v34 = vld [vmem:[#allocation24_spill] sm:$0xff] }
 0x14e   : > { %v1096_v55 = vadd.f32 %v1051_v14, %v971_v47  ;;  %v3329_v17 = vrot.slane %v3328_v34, 2  ;;  %v1448_v20 = vmul.f32 %v2386_v50, %v619_v23  ;;  %v931_v57 = vsel %vm908_vm2, %v929_v8, %v930_v22  ;;  %v3056_v34 = vld [vmem:[%s3237_s3 + $0x4] ss:$0 sm:$0xff] }
 0x14f   : > { %v1234_v61 = vrot.slane %v1180_v36, 1  ;;  %v1486_v5 = vmul.f32 %v2329_v19, %v619_v23  ;;  %v973_v33 = vadd.f32 %v931_v57, %v832_v54  ;;  %v1358_v62 = vrot.slane %v1304_v51, 2  ;;  %v2058_v36 = vld [vmem:[%s3237_s3 + $0x3] ss:$0 sm:$0xff] }
 0x150   : > { %v1355_v18 = vsel %vm1033_vm3, %v3329_v17, %v1354_v21  ;;  %v1157_v35 = vadd.f32 %v1141_v24, %v1096_v55  ;;  %v1610_v31 = vmul.f32 %v2348_v29, %v619_v23  ;;  %v776_v37 = vmax.f32 %v755_v49, 0.0  ;;  %v2057_v29 = vld [vmem:[%s3237_s3] ss:$0 sm:$0xff] }
 0x151   : > { %v1403_v42 = vadd.f32 %v1355_v18, %v1279_v3  ;;  %v1236_v21 = vsel %vm908_vm2, %v1234_v61, %v1235_v11  ;;  %v1538_v45 = vrot.slane %v1486_v5, 1  ;;  %v622_v47 = vmax.f32 %v1986_v53, 0.0  ;;  %v3062_v18 = vld [vmem:[%s3237_s3 + $0x5] ss:$0 sm:$0xff]  ;;  %v2009_v61 = vpop.f32.mrf.mxu1  ;;  %v558_v5 = vpop.f32.mrf.mxu0 }
 0x152   : > { %v1281_v39 = vadd.f32 %v1236_v21, %v1157_v35  ;;  %v1662_v40 = vrot.slane %v1610_v31, 2  ;;  %v1056_v14 = vsel %vm1033_vm3, %v1054_v9, %v1055_v6  ;;  %783 = vst [vmem:[#allocation2 + $0x98] sm:$0xff] %v776_v37  ;;  %v1360_v57 = vsel %vm1033_vm3, %v1358_v62, %v1359_v7  ;;  %v3332_v21 = vld [vmem:[#allocation4_spill] sm:$0xff] }
 0x153   : > { %v1464_v32 = vadd.f32 %v1448_v20, %v1403_v42  ;;  %v1540_v19 = vsel %vm908_vm2, %v1538_v45, %v1539_v13  ;;  %v834_v23 = vmul.f32 %v2057_v29, %v622_v47  ;;  %v875_v54 = vmul.f32 %v2998_v28, %v622_v47  ;;  %v3086_v29 = vld [vmem:[%s3237_s3 + $0x8] ss:$0 sm:$0xff] }
 0x154   : > { %v1000_v55 = vmul.f32 %v3004_v46, %v622_v47  ;;  %v1664_v24 = vsel %vm1033_vm3, %v1662_v40, %v1663_v41  ;;  %v1098_v9 = vadd.f32 %v1056_v14, %v973_v33  ;;  %v1143_v43 = vmul.f32 %v2058_v36, %v622_v47  ;;  %v3330_v33 = vld [vmem:[#allocation3_spill] sm:$0xff] }
 0x155   : > { %v1588_v8 = vadd.f32 %v1540_v19, %v1464_v32  ;;  %v934_v3 = vrot.slane %v875_v54, 1  ;;  %v1183_v17 = vmul.f32 %v3056_v34, %v622_v47  ;;  %v1307_v20 = vmul.f32 %v3062_v18, %v622_v47 }
 0x156   : > { %v1059_v51 = vrot.slane %v1000_v55, 2  ;;  %v1159_v53 = vadd.f32 %v1143_v43, %v1098_v9  ;;  %v1450_v35 = vmul.f32 %v2386_v50, %v622_v47  ;;  %v3331_v42 = vrot.slane %v3330_v33, 1  ;;  %v3080_v50 = vld [vmem:[%s3237_s3 + $0x7] ss:$0 sm:$0xff]  ;;  %v3334_v55 = vld [vmem:[#allocation6_spill] sm:$0xff] }
 0x157   : > { %v1712_v49 = vadd.f32 %v1664_v24, %v1588_v8  ;;  %v3333_v45 = vrot.slane %v3332_v21, 2  ;;  %v1239_v32 = vrot.slane %v1183_v17, 1  ;;  %v1363_v40 = vrot.slane %v1307_v20, 2  ;;  %v3338_v21 = vld [vmem:[#allocation19_spill] sm:$0xff] }
 0x158   : > { %v936_v31 = vsel %vm908_vm2, %v934_v3, %v3331_v42  ;;  %v1405_v19 = vadd.f32 %v1360_v57, %v1281_v39  ;;  %v1489_v62 = vmul.f32 %v3080_v50, %v622_v47  ;;  %v1613_v54 = vmul.f32 %v3086_v29, %v622_v47 }
 0x159   : > { %v1061_v37 = vsel %vm1033_vm3, %v1059_v51, %v3333_v45  ;;  %1729 = vst.msk [vmem:[%s2639_s23 + $0x20] sm:$0xff] %vm1724_vm4, %v1712_v49  ;;  %v975_v14 = vadd.f32 %v936_v31, %v834_v23  ;;  %v3335_v8 = vrot.slane %v3334_v55, 1  ;;  %v3336_v23 = vld [vmem:[#allocation7_spill] sm:$0xff]  ;;  %v779_v36 = vmax.f32 %v2009_v61, 0.0  ;;  %v1130_v3 = vld [vmem:[#allocation2 + $0x98] sm:$0x3] }
 0x15a   : > { %v3337_v39 = vrot.slane %v3336_v23, 2  ;;  %v621_v43 = vmax.f32 %v558_v5, 0.0  ;;  %v1436_v51 = vld [vmem:[#allocation2 + $0x98] sm:$0x3]  ;;  %v1466_v49 = vadd.f32 %v1450_v35, %v1405_v19  ;;  %v1543_v57 = vrot.slane %v1489_v62, 1  ;;  %v3339_v5 = vld [vmem:[#allocation10_spill] sm:$0xff] }
 0x15b   : > { %v1241_v24 = vsel %vm908_vm2, %v1239_v32, %v3335_v8  ;;  %v1100_v17 = vadd.f32 %v1061_v37, %v975_v14  ;;  %v1194_v33 = vmul.f32 %v3056_v34, %v1130_v3  ;;  %v1318_v47 = vmul.f32 %v3062_v18, %v1130_v3  ;;  %786 = vst [vmem:[#allocation2 + $0x20] sm:$0xff] %v779_v36  ;;  %v3341_v55 = vld [vmem:[#allocation21_spill] sm:$0xff]  ;;  %v765_v36 = vpop.f32.mrf.mxu1 }
 0x15c   : > { %v1365_v9 = vsel %vm1033_vm3, %v1363_v40, %v3337_v39  ;;  %v1283_v20 = vadd.f32 %v1241_v24, %v1159_v53  ;;  %v1500_v42 = vmul.f32 %v3080_v50, %v1436_v51  ;;  %v1624_v31 = vmul.f32 %v3086_v29, %v1436_v51  ;;  %645 = vst [vmem:[#allocation2 + $0x70] sm:$0xff] %v621_v43  ;;  %v3342_v24 = vld [vmem:[#allocation20_spill] sm:$0xff]  ;;  %v3344_v51 = vld [vmem:[#allocation11_spill] sm:$0xff] }
 0x15d   : > { %v1161_v45 = vadd.f32 %v3338_v21, %v1100_v17  ;;  %v3340_v32 = vrot.slane %v3339_v5, 1  ;;  %v1667_v53 = vrot.slane %v1613_v54, 2  ;;  %v1257_v35 = vrot.slane %v1194_v33, 1  ;;  %v3346_v33 = vld [vmem:[#allocation22_spill] sm:$0xff] }
 0x15e   : > { %v1407_v61 = vadd.f32 %v1365_v9, %v1283_v20  ;;  %v1381_v40 = vrot.slane %v1318_v47, 2  ;;  %v1561_v14 = vrot.slane %v1500_v42, 1  ;;  %v1685_v19 = vrot.slane %v1624_v31, 2  ;;  %v3347_v47 = vld [vmem:[#allocation17_spill] sm:$0xff] }
 0x15f   : > { %v1545_v37 = vsel %vm908_vm2, %v1543_v57, %v3340_v32  ;;  %v3105_v62 = vmul.f32 %v3080_v50, %v2976_v30  ;;  %v1285_v8 = vadd.f32 %v3341_v55, %v1161_v45  ;;  %v3111_v9 = vmul.f32 %v3086_v29, %v2976_v30 }
 0x160   : > { %v1468_v23 = vadd.f32 %v3342_v24, %v1407_v61  ;;  %v1590_v39 = vadd.f32 %v1545_v37, %v1466_v49  ;;  %v1258_v54 = vsel %vm908_vm2, %v1255_v56, %v1257_v35  ;;  %v3343_v43 = vrot.slane %v2862_v44, 1  ;;  %v3350_v61 = vld [vmem:[#allocation23_spill] sm:$0xff] }
 0x161   : > { %v3345_v17 = vrot.slane %v3344_v51, 2  ;;  %v1290_v57 = vadd.f32 %v1258_v54, %v2858_v59  ;;  %v1409_v30 = vadd.f32 %v3346_v33, %v1285_v8  ;;  %v3348_v26 = vrot.slane %v2846_v15, 2 }
 0x162   : > { %v1562_v3 = vsel %vm908_vm2, %v3343_v43, %v1561_v14  ;;  %v1592_v42 = vadd.f32 %v3347_v47, %v1468_v23  ;;  %v3349_v44 = vrot.slane %v2866_v12, 2  ;;  %v778_v45 = vmax.f32 %v765_v36, 0.0 }
 0x163   : > { %v1669_v20 = vsel %vm1033_vm3, %v1667_v53, %v3345_v17  ;;  %v1597_v49 = vadd.f32 %v1562_v3, %v2868_v16  ;;  %v1382_v56 = vsel %vm1033_vm3, %v3348_v26, %v1381_v40  ;;  %v1470_v32 = vadd.f32 %v3350_v61, %v1409_v30  ;;  %v3351_v16 = vld [vmem:[#allocation18_spill] sm:$0xff]  ;;  %v1439_v53 = vld [vmem:[#allocation2 + $0x20] sm:$0x3]  ;;  %v810_v35 = vld [vmem:[#allocation2 + $0x70] sm:$0x3] }
 0x164   : > { %v1686_v31 = vsel %vm1033_vm3, %v3349_v44, %v1685_v19  ;;  %v1714_v21 = vadd.f32 %v1669_v20, %v1590_v39  ;;  %v1716_v37 = vadd.f32 %v3351_v16, %v1592_v42  ;;  %v1118_v14 = vld [vmem:[#allocation2 + $0x70] sm:$0x3]  ;;  %v1414_v55 = vadd.f32 %v1382_v56, %v1290_v57 }
 0x165   : > { %v1721_v59 = vadd.f32 %v1686_v31, %v1597_v49  ;;  %v1474_v15 = vadd.f32 %v3015_v52, %v2985_v38  ;;  %v1503_v12 = vmul.f32 %v3080_v50, %v1439_v53  ;;  %v874_v40 = vmul.f32 %v2998_v28, %v810_v35  ;;  %v1424_v8 = vld [vmem:[#allocation2 + $0x70] sm:$0x3] }
 0x166   : > { %1731 = vst.msk [vmem:[%s2639_s23 + $0x30] sm:$0xff] %vm1724_vm4, %v1714_v21  ;;  %v999_v19 = vmul.f32 %v3004_v46, %v810_v35  ;;  %v1594_v24 = vadd.f32 %v2824_v1, %v1470_v32  ;;  %1733 = vst.msk [vmem:[%s2639_s23 + $0x40] sm:$0xff] %vm1724_vm4, %v1716_v37  ;;  %v1182_v23 = vmul.f32 %v3056_v34, %v1118_v14  ;;  %v1563_v39 = vrot.slane %v3105_v62, 1  ;;  %v2063_v62 = vld [vmem:[%s3237_s3 + $0x6] ss:$0 sm:$0xff]  ;;  %v3356_v31 = vld [vmem:[#allocation27_spill] sm:$0xff] }
 0x167   : > { %1738 = vst.msk [vmem:[%s2639_s23 + $0x68] sm:$0xff] %vm1724_vm4, %v1721_v59  ;;  %v1306_v38 = vmul.f32 %v3062_v18, %v1118_v14  ;;  %v1488_v52 = vmul.f32 %v3080_v50, %v1424_v8  ;;  %v1687_v28 = vrot.slane %v3111_v9, 2  ;;  %v932_v36 = vrot.slane %v874_v40, 1 }
 0x168   : > { %v1057_v46 = vrot.slane %v999_v19, 2  ;;  %v1718_v54 = vadd.f32 %v2829_v48, %v1594_v24  ;;  %v1237_v43 = vrot.slane %v1182_v23, 1  ;;  %v1627_v17 = vmul.f32 %v3086_v29, %v1439_v53  ;;  %v3363_v23 = vld [vmem:[#allocation14_spill] sm:$0xff] }
 0x169   : > { %v1361_v3 = vrot.slane %v1306_v38, 2  ;;  %v1541_v1 = vrot.slane %v1488_v52, 1  ;;  %v933_v34 = vsel %vm908_vm2, %v930_v22, %v932_v36  ;;  %v1612_v18 = vmul.f32 %v3086_v29, %v1424_v8  ;;  %v2064_v8 = vld [vmem:[#allocation2 + $0x10] sm:$0xff] }
 0x16a   : > { %v1459_v9 = vmul.f32 %v2063_v62, %v778_v45  ;;  %1735 = vst.msk [vmem:[%s2639_s23 + $0x50] sm:$0xff] %vm1724_vm4, %v1718_v54  ;;  %v1566_v20 = vrot.slane %v1503_v12, 1  ;;  %v974_v48 = vadd.f32 %v933_v34, %v2960_v25  ;;  %v1238_v57 = vsel %vm908_vm2, %v1235_v11, %v1237_v43 }
 0x16b   : > { %v1542_v60 = vsel %vm908_vm2, %v1539_v13, %v1541_v1  ;;  %v1058_v22 = vsel %vm1033_vm3, %v1055_v6, %v1057_v46  ;;  %v1282_v49 = vadd.f32 %v1238_v57, %v2988_v27  ;;  %v1665_v30 = vrot.slane %v1612_v18, 2  ;;  %v3352_v27 = vld [vmem:[#allocation5_spill] sm:$0xff] }
 0x16c   : > { %v1589_v33 = vadd.f32 %v1542_v60, %v2992_v58  ;;  %v1099_v47 = vadd.f32 %v1058_v22, %v974_v48  ;;  %v1362_v25 = vsel %vm1033_vm3, %v1359_v7, %v1361_v3  ;;  %v1502_v10 = vmul.f32 %v3080_v50, %v778_v45  ;;  %v3366_v3 = vld [vmem:[#allocation16_spill] sm:$0xff] }
 0x16d   : > { %v1626_v0 = vmul.f32 %v3086_v29, %v778_v45  ;;  %v1690_v11 = vrot.slane %v1627_v17, 2  ;;  %v1406_v13 = vadd.f32 %v1362_v25, %v1282_v49  ;;  %v1666_v63 = vsel %vm1033_vm3, %v1663_v41, %v1665_v30  ;;  %v3357_v45 = vld [vmem:[#allocation25_spill] sm:$0xff]  ;;  %v3359_v41 = vld [vmem:[#allocation12_spill] sm:$0xff] }
 0x16e   : > { %v1475_v6 = vadd.f32 %v1459_v9, %v1414_v55  ;;  %v1160_v58 = vadd.f32 %v3352_v27, %v1099_v47  ;;  %v1713_v42 = vadd.f32 %v1666_v63, %v1589_v33  ;;  %v1564_v26 = vrot.slane %v1502_v10, 1  ;;  %v3360_v55 = vld [vmem:[#allocation9_spill] sm:$0xff] }
 0x16f   : > { %v1688_v56 = vrot.slane %v1626_v0, 2  ;;  %v3354_v44 = vrot.slane %v3353_v4, 1  ;;  %v3355_v7 = vrot.slane %v3339_v5, 1  ;;  %v1551_v21 = vrot.slane %v3356_v31, 1 }
 0x170   : > { %v1618_v59 = vmul.f32 %v3086_v29, %v3357_v45  ;;  %v1467_v61 = vadd.f32 %v3358_v2, %v1406_v13  ;;  %v1284_v32 = vadd.f32 %v3359_v41, %v1160_v58  ;;  %1730 = vst.msk [vmem:[%s2639_s23 + $0x28] sm:$0xff] %vm1724_vm4, %v1713_v42  ;;  %v1565_v16 = vsel %vm908_vm2, %v1563_v39, %v1564_v26 }
 0x171   : > { %v1547_v50 = vsel %vm908_vm2, %v3355_v7, %v3354_v44  ;;  %v1567_v37 = vsel %vm908_vm2, %v1564_v26, %v1566_v20  ;;  %v1689_v5 = vsel %vm1033_vm3, %v1687_v28, %v1688_v56  ;;  %v1598_v35 = vadd.f32 %v1565_v16, %v1474_v15  ;;  %v3364_v15 = vld [vmem:[#allocation15_spill] sm:$0xff] }
 0x172   : > { %v1591_v53 = vadd.f32 %v1547_v50, %v1467_v61  ;;  %v1599_v14 = vadd.f32 %v1567_v37, %v1475_v6  ;;  %v1691_v29 = vsel %vm1033_vm3, %v1688_v56, %v1690_v11  ;;  %v3361_v12 = vrot.slane %v3360_v55, 2 }
 0x173   : > { %v3362_v40 = vrot.slane %v3344_v51, 2  ;;  %v1453_v24 = vmul.f32 %v2064_v8, %v2063_v62  ;;  %v1408_v38 = vadd.f32 %v3363_v23, %v1284_v32  ;;  %v1675_v52 = vrot.slane %v1618_v59, 2 }
 0x174   : > { %v1722_v28 = vadd.f32 %v1689_v5, %v1598_v35  ;;  %v1723_v36 = vadd.f32 %v1691_v29, %v1599_v14  ;;  %v3365_v54 = vrot.slane %v3364_v15, 1  ;;  %v3367_v1 = vrot.slane %v3366_v3, 2 }
 0x175   : > { %v1671_v19 = vsel %vm1033_vm3, %v3362_v40, %v3361_v12  ;;  %v1469_v46 = vadd.f32 %v1453_v24, %v1408_v38 }
 0x176   : > { %v1715_v39 = vadd.f32 %v1671_v19, %v1591_v53  ;;  %v1552_v43 = vsel %vm908_vm2, %v3365_v54, %v1551_v21  ;;  %1739 = vst.msk [vmem:[%s2639_s23 + $0x70] sm:$0xff] %vm1724_vm4, %v1722_v28  ;;  %1740 = vst.msk [vmem:[%s2639_s23 + $0x78] sm:$0xff] %vm1724_vm4, %v1723_v36  ;;  %v1676_v17 = vsel %vm1033_vm3, %v3367_v1, %v1675_v52 }
 0x177   : > { %v1593_v51 = vadd.f32 %v1552_v43, %v1469_v46 }
 0x178   : > { %1732 = vst.msk [vmem:[%s2639_s23 + $0x38] sm:$0xff] %vm1724_vm4, %v1715_v39 }
 0x179   : > { %v1717_v34 = vadd.f32 %v1676_v17, %v1593_v51 }
 0x17b   : > { %1734 = vst.msk [vmem:[%s2639_s23 + $0x48] sm:$0xff] %vm1724_vm4, %v1717_v34 }
 0x17c PF: > { %s14_s19 = sadd.s32 1, %s2103_s19   ;;  %s3368_s15 = smov %s2095_s17 }
 0x17d   : > { %p11_p9 = scmp.ge.s32.totalorder %s14_s19, 6   ;;  %s3369_s16 = smov %s2099_s18 }
 0x17e   : > { %s3370_s17 = smov %s3373_s20  ;;  %s3371_s18 = smov %s3377_s21 }
 0x17f   :  { %13 = sbr.rel (!%p11_p9) target bundleno = 3 (0x3), region = 72 }

</bundles_post_ra>
